<compile_context>
chip_gen: v7x
topology: tpu7x:2x2x1
jax: 0.10.0
libtpu: 0.0.40
codegen_flags: <defaults>
</compile_context>

<pallas_src>
import jax
import jax.numpy as jnp
import numpy as np
from jax.experimental import pallas as pl
from jax.experimental.pallas import tpu as pltpu

IN_FEATURES = 784
HIDDEN = 1024
NUM_CLASSES = 10
CLASS_PAD = 128          # lane-dense padded class dimension
NEG_BIG = -1e30          # additive mask value for padded class lanes


# ---------------------------------------------------------------------------
# Fused kernel: fc1 -> fc2 -> square -> log_softmax   (one MXU+VPU+EUP pass)
# ---------------------------------------------------------------------------
def _fc1_fused_kernel(x_ref, w1_ref, b1_ref, w2_ref, b2_ref, mask_ref, o_ref):
    # x_ref:  (TM, 784)  bf16      w1_ref: (784, 1024) bf16     b1_ref: (1, 1024) f32
    # w2_ref: (1024, 128) bf16 (zero-padded)  b2_ref: (1, 128) f32 (zero-padded)
    # mask_ref: (1, 128) f32: 0 for the 10 real classes, -1e30 for pad lanes.
    h = jnp.dot(x_ref[...], w1_ref[...], preferred_element_type=jnp.float32)
    h = h + b1_ref[...]                                        # fc1 (no activation in spec)

    z = jnp.dot(h.astype(jnp.bfloat16), w2_ref[...],
                preferred_element_type=jnp.float32)
    z = z + b2_ref[...]                                        # fc2
    z = z * z + mask_ref[...]                                  # x*x, then mask pad lanes

    # Numerically-stable log_softmax over the class dim.
    m = jnp.max(z, axis=-1, keepdims=True)
    s = z - m
    lse = jnp.log(jnp.sum(jnp.exp(s), axis=-1, keepdims=True))
    o_ref[...] = (s - lse).astype(o_ref.dtype)


# ---------------------------------------------------------------------------
# Batch-tile selection (static; n is a compile-time shape)
# ---------------------------------------------------------------------------
def _choose_tm(n: int) -> int:
    if n <= 8:
        return 8                                  # tiny batch: one sublane-aligned tile
    if n < 256:
        return ((n + 127) // 128) * 128           # full 128-row MXU passes (v5e-friendly)
    if n < 512:
        return 256
    # Large batch: big tiles to amortize the ~0.35us/step overhead, but keep
    # >= 2 grid steps so both v7x TensorCores get work on the parallel axis.
    half = (n + 1) // 2
    return min(1024, ((half + 255) // 256) * 256)


# ---------------------------------------------------------------------------
# Wrapper: layout prep (transpose / pad / bf16 cast) + single pallas_call
# ---------------------------------------------------------------------------
@jax.jit
def classical_fc1_forward(x, params):
    w1, b1, w2, b2 = params            # PyTorch shapes: (1024,784),(1024,),(10,1024),(10,)
    n = x.shape[0]
    xf = x.reshape(n, IN_FEATURES).astype(jnp.bfloat16)

    tm = _choose_tm(n)
    m_pad = ((n + tm - 1) // tm) * tm
    if m_pad != n:
        xf = jnp.pad(xf, ((0, m_pad - n), (0, 0)))

    # Weight layout: (in, out) bf16; class dim zero-padded to 128 lanes.
    w1t = w1.T.astype(jnp.bfloat16)                                         # (784, 1024)
    b1r = b1.astype(jnp.float32).reshape(1, HIDDEN)                         # (1, 1024)
    w2t = jnp.pad(w2.T.astype(jnp.float32),
                  ((0, 0), (0, CLASS_PAD - NUM_CLASSES))).astype(jnp.bfloat16)  # (1024, 128)
    b2r = jnp.pad(b2.astype(jnp.float32),
                  (0, CLASS_PAD - NUM_CLASSES)).reshape(1, CLASS_PAD)       # (1, 128)
    mask = jnp.concatenate(
        [jnp.zeros((NUM_CLASSES,), jnp.float32),
         jnp.full((CLASS_PAD - NUM_CLASSES,), NEG_BIG, jnp.float32)]
    ).reshape(1, CLASS_PAD)                                                 # (1, 128)

    grid = (m_pad // tm,)
    resident = pl.Buffered(1)   # constant block index -> second pipeline buffer is waste

    out_padded = pl.pallas_call(
        _fc1_fused_kernel,
        out_shape=jax.ShapeDtypeStruct((m_pad, CLASS_PAD), jnp.float32),
        grid=grid,
        in_specs=[
            pl.BlockSpec((tm, IN_FEATURES), lambda i: (i, 0)),                # x rows: tiled
            pl.BlockSpec((IN_FEATURES, HIDDEN), lambda i: (0, 0),
                         pipeline_mode=resident),                             # w1 resident
            pl.BlockSpec((1, HIDDEN), lambda i: (0, 0),
                         pipeline_mode=resident),                             # b1 resident
            pl.BlockSpec((HIDDEN, CLASS_PAD), lambda i: (0, 0),
                         pipeline_mode=resident),                             # w2 resident
            pl.BlockSpec((1, CLASS_PAD), lambda i: (0, 0),
                         pipeline_mode=resident),                             # b2 resident
            pl.BlockSpec((1, CLASS_PAD), lambda i: (0, 0),
                         pipeline_mode=resident),                             # class mask
        ],
        out_specs=pl.BlockSpec((tm, CLASS_PAD), lambda i: (i, 0)),            # lane-dense out
        compiler_params=pltpu.CompilerParams(
            dimension_semantics=("parallel",),
            vmem_limit_bytes=48 * 1024 * 1024,
        ),
    )(xf, w1t, b1r, w2t, b2r, mask)

    logits = out_padded[:n, :NUM_CLASSES]      # drop batch + class padding
    return jnp.squeeze(logits)                 # matches torch .squeeze()


# ---------------------------------------------------------------------------
# References: (a) exact bf16-mirrored arithmetic, (b) pure-f32 semantics
# ---------------------------------------------------------------------------
def reference_forward_bf16(x, params):
    w1, b1, w2, b2 = params
    n = x.shape[0]
    xf = x.reshape(n, IN_FEATURES).astype(jnp.bfloat16)
    h = jnp.dot(xf, w1.T.astype(jnp.bfloat16),
                preferred_element_type=jnp.float32) + b1.astype(jnp.float32)
    z = jnp.dot(h.astype(jnp.bfloat16), w2.T.astype(jnp.bfloat16),
                preferred_element_type=jnp.float32) + b2.astype(jnp.float32)
    z = z * z
    return jnp.squeeze(jax.nn.log_softmax(z, axis=1))


def reference_forward_f32(x, params):
    w1, b1, w2, b2 = params
    n = x.shape[0]
    xf = x.reshape(n, IN_FEATURES).astype(jnp.float32)
    z1 = xf @ w1.T + b1
    z2 = z1 @ w2.T + b2
    z2 = z2 * z2
    return jnp.squeeze(jax.nn.log_softmax(z2, axis=1))


if __name__ == "__main__":
    key = jax.random.PRNGKey(0)
    ks = jax.random.split(key, 5)

    # Deterministic synthetic parameters (PyTorch Linear layout: (out, in)).
    params = (
        jax.random.normal(ks[0], (HIDDEN, IN_FEATURES), jnp.float32) * 0.05,  # fc1.weight
        jax.random.normal(ks[1], (HIDDEN,), jnp.float32) * 0.05,              # fc1.bias
        jax.random.normal(ks[2], (NUM_CLASSES, HIDDEN), jnp.float32) * 0.05,  # fc2.weight
        jax.random.normal(ks[3], (NUM_CLASSES,), jnp.float32) * 0.05,         # fc2.bias
    )

    # Small deterministic input: batch=2, MNIST-style NCHW (1x28x28 -> 784 on view).
    x = jax.random.normal(ks[4], (2, 1, 28, 28), jnp.float32)

    out = jax.block_until_ready(classical_fc1_forward(x, params))
    ref_bf16 = jax.block_until_ready(reference_forward_bf16(x, params))
    ref_f32 = jax.block_until_ready(reference_forward_f32(x, params))

    assert out.shape == (2, NUM_CLASSES)
    assert bool(jnp.all(jnp.isfinite(out)))
    # rows of exp(log_softmax) must sum to 1
    np.testing.assert_allclose(np.asarray(jnp.exp(out).sum(axis=1)), 1.0, atol=1e-4)
    # tight check vs. a reference mirroring the kernel's bf16/f32 arithmetic
    np.testing.assert_allclose(np.asarray(out), np.asarray(ref_bf16), atol=1e-3, rtol=1e-3)
    # loose sanity check vs. pure-f32 semantics (bf16 operand quantization error)
    np.testing.assert_allclose(np.asarray(out), np.asarray(ref_f32), atol=0.5)

    print("KERNEL_OK")
</pallas_src>

<mosaic_0001>
module attributes {stable_mosaic.version = 11 : i64} {
  func.func @_fc1_fused_kernel(%arg0: i32, %arg1: memref<8x784xbf16, #tpu.memory_space<vmem>>, %arg2: memref<784x1024xbf16, #tpu.memory_space<vmem>>, %arg3: memref<1x1024xf32, #tpu.memory_space<vmem>>, %arg4: memref<1024x128xbf16, #tpu.memory_space<vmem>>, %arg5: memref<1x128xf32, #tpu.memory_space<vmem>>, %arg6: memref<1x128xf32, #tpu.memory_space<vmem>>, %arg7: memref<8x128xf32, #tpu.memory_space<vmem>>) attributes {dimension_semantics = [#tpu.dimension_semantics<parallel>], iteration_bounds = array<i64: 1>, scalar_prefetch = 0 : i64, scratch_operands = 0 : i64, tpu.core_type = #tpu.core_type<tc>, window_params = [{transform_indices = @transform_0, window_bounds = array<i64: 8, 784>}, {pipeline_mode = #tpu.pipeline_mode<synchronous>, transform_indices = @transform_1, window_bounds = array<i64: 784, 1024>}, {pipeline_mode = #tpu.pipeline_mode<synchronous>, transform_indices = @transform_2, window_bounds = array<i64: 1, 1024>}, {pipeline_mode = #tpu.pipeline_mode<synchronous>, transform_indices = @transform_3, window_bounds = array<i64: 1024, 128>}, {pipeline_mode = #tpu.pipeline_mode<synchronous>, transform_indices = @transform_4, window_bounds = array<i64: 1, 128>}, {pipeline_mode = #tpu.pipeline_mode<synchronous>, transform_indices = @transform_5, window_bounds = array<i64: 1, 128>}, {transform_indices = @transform_6, window_bounds = array<i64: 8, 128>}]} {
    %c0 = arith.constant 0 : index
    %c0_0 = arith.constant 0 : index
    %0 = vector.load %arg1[%c0, %c0_0] : memref<8x784xbf16, #tpu.memory_space<vmem>>, vector<8x784xbf16>
    %c0_1 = arith.constant 0 : index
    %c0_2 = arith.constant 0 : index
    %1 = vector.load %arg2[%c0_1, %c0_2] : memref<784x1024xbf16, #tpu.memory_space<vmem>>, vector<784x1024xbf16>
    %cst = arith.constant dense<0.000000e+00> : vector<8x1024xf32>
    %2 = tpu.matmul %0, %1, %cst {dimension_numbers = #tpu.dot_dimension_numbers<[1], [0], [0], [1], [0, 0, 1, 1], [], []>} : vector<8x784xbf16>, vector<784x1024xbf16>, vector<8x1024xf32> -> vector<8x1024xf32>
    %c0_3 = arith.constant 0 : index
    %c0_4 = arith.constant 0 : index
    %3 = vector.load %arg3[%c0_3, %c0_4] : memref<1x1024xf32, #tpu.memory_space<vmem>>, vector<1x1024xf32>
    %4 = vector.broadcast %3 : vector<1x1024xf32> to vector<8x1024xf32>
    %5 = arith.addf %2, %4 : vector<8x1024xf32>
    %6 = arith.truncf %5 : vector<8x1024xf32> to vector<8x1024xbf16>
    %c0_5 = arith.constant 0 : index
    %c0_6 = arith.constant 0 : index
    %7 = vector.load %arg4[%c0_5, %c0_6] : memref<1024x128xbf16, #tpu.memory_space<vmem>>, vector<1024x128xbf16>
    %cst_7 = arith.constant dense<0.000000e+00> : vector<8x128xf32>
    %8 = tpu.matmul %6, %7, %cst_7 {dimension_numbers = #tpu.dot_dimension_numbers<[1], [0], [0], [1], [0, 0, 1, 1], [], []>} : vector<8x1024xbf16>, vector<1024x128xbf16>, vector<8x128xf32> -> vector<8x128xf32>
    %c0_8 = arith.constant 0 : index
    %c0_9 = arith.constant 0 : index
    %9 = vector.load %arg5[%c0_8, %c0_9] : memref<1x128xf32, #tpu.memory_space<vmem>>, vector<1x128xf32>
    %10 = vector.broadcast %9 : vector<1x128xf32> to vector<8x128xf32>
    %11 = arith.addf %8, %10 : vector<8x128xf32>
    %12 = arith.mulf %11, %11 : vector<8x128xf32>
    %c0_10 = arith.constant 0 : index
    %c0_11 = arith.constant 0 : index
    %13 = vector.load %arg6[%c0_10, %c0_11] : memref<1x128xf32, #tpu.memory_space<vmem>>, vector<1x128xf32>
    %14 = vector.broadcast %13 : vector<1x128xf32> to vector<8x128xf32>
    %15 = arith.addf %12, %14 : vector<8x128xf32>
    %cst_12 = arith.constant dense<0xFF800000> : vector<8xf32>
    %16 = vector.multi_reduction <maximumf>, %15, %cst_12 [1] : vector<8x128xf32> to vector<8xf32>
    %17 = vector.shape_cast %16 : vector<8xf32> to vector<8x1xf32>
    %18 = vector.broadcast %17 : vector<8x1xf32> to vector<8x128xf32>
    %19 = arith.subf %15, %18 : vector<8x128xf32>
    %20 = math.exp %19 : vector<8x128xf32>
    %cst_13 = arith.constant dense<0.000000e+00> : vector<8xf32>
    %21 = vector.multi_reduction <add>, %20, %cst_13 [1] : vector<8x128xf32> to vector<8xf32>
    %22 = vector.shape_cast %21 : vector<8xf32> to vector<8x1xf32>
    %23 = math.log %22 : vector<8x1xf32>
    %24 = vector.broadcast %23 : vector<8x1xf32> to vector<8x128xf32>
    %25 = arith.subf %19, %24 : vector<8x128xf32>
    %c0_14 = arith.constant 0 : index
    %c0_15 = arith.constant 0 : index
    %26 = vector.load %arg7[%c0_14, %c0_15] : memref<8x128xf32, #tpu.memory_space<vmem>>, vector<8x128xf32>
    tpu.vector_store %arg7[%c0_14, %c0_15], %25 {strides = array<i32>} : memref<8x128xf32, #tpu.memory_space<vmem>>, vector<8x128xf32>,
    return
  }
  func.func @transform_0(%arg0: i32) -> (i32, i32) {
    %c0_i32 = arith.constant 0 : i32
    %c0_i32_0 = arith.constant 0 : i32
    return %arg0, %c0_i32 : i32, i32
  }
  func.func @transform_1(%arg0: i32) -> (i32, i32) {
    %c0_i32 = arith.constant 0 : i32
    %c0_i32_0 = arith.constant 0 : i32
    %c0_i32_1 = arith.constant 0 : i32
    return %c0_i32, %c0_i32_0 : i32, i32
  }
  func.func @transform_2(%arg0: i32) -> (i32, i32) {
    %c0_i32 = arith.constant 0 : i32
    %c0_i32_0 = arith.constant 0 : i32
    %c0_i32_1 = arith.constant 0 : i32
    return %c0_i32, %c0_i32_0 : i32, i32
  }
  func.func @transform_3(%arg0: i32) -> (i32, i32) {
    %c0_i32 = arith.constant 0 : i32
    %c0_i32_0 = arith.constant 0 : i32
    %c0_i32_1 = arith.constant 0 : i32
    return %c0_i32, %c0_i32_0 : i32, i32
  }
  func.func @transform_4(%arg0: i32) -> (i32, i32) {
    %c0_i32 = arith.constant 0 : i32
    %c0_i32_0 = arith.constant 0 : i32
    %c0_i32_1 = arith.constant 0 : i32
    return %c0_i32, %c0_i32_0 : i32, i32
  }
  func.func @transform_5(%arg0: i32) -> (i32, i32) {
    %c0_i32 = arith.constant 0 : i32
    %c0_i32_0 = arith.constant 0 : i32
    %c0_i32_1 = arith.constant 0 : i32
    return %c0_i32, %c0_i32_0 : i32, i32
  }
  func.func @transform_6(%arg0: i32) -> (i32, i32) {
    %c0_i32 = arith.constant 0 : i32
    %c0_i32_0 = arith.constant 0 : i32
    return %arg0, %c0_i32 : i32, i32
  }
}

</mosaic_0001>

<bundles_post_ra>
// kernel: classical_fc1_forward.1
= control target key start
LH: loop header
LB: loop body
LE: loop exit
PB: predicated region body
PF: predicated region fallthrough
CT: control target
= control target key end

     0   :  { %vm2446_vm0 = vcmask 130048   ;;  %s6020_s1 = inlined_call_operand.vmem [shape: bf16[784,1024], index: 1, kind: input, shape index: {}]   ;;  %s6021_s0 = inlined_call_operand.vmem [shape: bf16[8,784], index: 0, kind: input, shape index: {}]   ;;  %s6022_s3 = inlined_call_operand.vmem [shape: bf16[1024,128], index: 3, kind: input, shape index: {}]   ;;  %s6023_s2 = inlined_call_operand.vmem [shape: f32[1,1024], index: 2, kind: input, shape index: {}]   ;;  %s6024_s4 = inlined_call_operand.vmem [shape: f32[1,128], index: 4, kind: input, shape index: {}]   ;;  %s6025_s5 = inlined_call_operand.vmem [shape: f32[1,128], index: 5, kind: input, shape index: {}]   ;;  %s6026_s6 = inlined_call_operand.vmem [shape: f32[8,128], index: 6, kind: output, shape index: {}]  }
   0x1   :  { %v28_v0 = vld [vmem:[%s6020_s1] sm:$0xff]  ;;  %v29_v2 = vld [vmem:[%s6020_s1 + $0x8] sm:$0xff] }
   0x2   :  { %v32_v1 = vld [vmem:[%s6020_s1 + $0x20] sm:$0xff]  ;;  %v33_v4 = vld [vmem:[%s6020_s1 + $0x28] sm:$0xff] }
   0x3   :  { %v3825_v3 = vcombine.high %v28_v0, %v32_v1  ;;  %v3824_v5 = vcombine.low %v28_v0, %v32_v1  ;;  %v36_v6 = vld [vmem:[%s6020_s1 + $0x40] sm:$0xff]  ;;  %v3827_v8 = vcombine.high %v29_v2, %v33_v4  ;;  %v3826_v9 = vcombine.low %v29_v2, %v33_v4  ;;  %v37_v11 = vld [vmem:[%s6020_s1 + $0x48] sm:$0xff] }
   0x4   :  { %v40_v7 = vld [vmem:[%s6020_s1 + $0x60] sm:$0xff]  ;;  %v41_v12 = vld [vmem:[%s6020_s1 + $0x68] sm:$0xff] }
   0x5   :  { %v3833_v10 = vcombine.high %v36_v6, %v40_v7  ;;  %v44_v13 = vld [vmem:[%s6020_s1 + $0x80] sm:$0xff]  ;;  %2450 = vmatprep.subr.bf16.mxu0 %v3825_v3  ;;  %v3835_v14 = vcombine.high %v37_v11, %v41_v12  ;;  %v45_v16 = vld [vmem:[%s6020_s1 + $0x88] sm:$0xff]  ;;  %2614 = vmatprep.subr.bf16.mxu1 %v3827_v8  ;;  %v3832_v18 = vcombine.low %v36_v6, %v40_v7 }
   0x6   :  { %v48_v15 = vld [vmem:[%s6020_s1 + $0xa0] sm:$0xff]  ;;  %v49_v17 = vld [vmem:[%s6020_s1 + $0xa8] sm:$0xff]  ;;  %2451 = vmatpush1.bf16.msra.mxu0 %v3824_v5  ;;  %2615 = vmatpush1.bf16.msra.mxu1 %v3826_v9  ;;  %v3834_v19 = vcombine.low %v37_v11, %v41_v12 }
   0x7   :  { %2452 = vmatprep.subr.bf16.mxu0 %v3833_v10  ;;  %v3841_v20 = vcombine.high %v44_v13, %v48_v15  ;;  %2616 = vmatprep.subr.bf16.mxu1 %v3835_v14  ;;  %v3843_v21 = vcombine.high %v45_v16, %v49_v17  ;;  %v52_v22 = vld [vmem:[%s6020_s1 + $0xc0] sm:$0xff]  ;;  %v53_v24 = vld [vmem:[%s6020_s1 + $0xc8] sm:$0xff]  ;;  %v3840_v26 = vcombine.low %v44_v13, %v48_v15 }
   0x8   :  { %v56_v23 = vld [vmem:[%s6020_s1 + $0xe0] sm:$0xff]  ;;  %v57_v25 = vld [vmem:[%s6020_s1 + $0xe8] sm:$0xff]  ;;  %v3842_v27 = vcombine.low %v45_v16, %v49_v17 }
   0x9   :  { %v3849_v28 = vcombine.high %v52_v22, %v56_v23  ;;  %v3851_v29 = vcombine.high %v53_v24, %v57_v25  ;;  %v60_v30 = vld [vmem:[%s6020_s1 + $0x100] sm:$0xff]  ;;  %v61_v32 = vld [vmem:[%s6020_s1 + $0x108] sm:$0xff]  ;;  %v3848_v34 = vcombine.low %v52_v22, %v56_v23  ;;  %v3850_v35 = vcombine.low %v53_v24, %v57_v25 }
   0xa   :  { %2453 = vmatpush1.bf16.msra.mxu0 %v3832_v18  ;;  %2617 = vmatpush1.bf16.msra.mxu1 %v3834_v19  ;;  %v64_v31 = vld [vmem:[%s6020_s1 + $0x120] sm:$0xff]  ;;  %v65_v33 = vld [vmem:[%s6020_s1 + $0x128] sm:$0xff] }
   0xb   :  { %2454 = vmatprep.subr.bf16.mxu0 %v3841_v20  ;;  %2618 = vmatprep.subr.bf16.mxu1 %v3843_v21  ;;  %v3857_v36 = vcombine.high %v60_v30, %v64_v31  ;;  %v3859_v37 = vcombine.high %v61_v32, %v65_v33  ;;  %v68_v38 = vld [vmem:[%s6020_s1 + $0x140] sm:$0xff]  ;;  %v69_v40 = vld [vmem:[%s6020_s1 + $0x148] sm:$0xff]  ;;  %v3856_v42 = vcombine.low %v60_v30, %v64_v31 }
   0xc   :  { %v72_v39 = vld [vmem:[%s6020_s1 + $0x160] sm:$0xff]  ;;  %v73_v41 = vld [vmem:[%s6020_s1 + $0x168] sm:$0xff]  ;;  %v3858_v43 = vcombine.low %v61_v32, %v65_v33 }
   0xd   :  { %v3865_v44 = vcombine.high %v68_v38, %v72_v39  ;;  %v3867_v45 = vcombine.high %v69_v40, %v73_v41  ;;  %v76_v46 = vld [vmem:[%s6020_s1 + $0x180] sm:$0xff]  ;;  %v77_v48 = vld [vmem:[%s6020_s1 + $0x188] sm:$0xff]  ;;  %v3864_v50 = vcombine.low %v68_v38, %v72_v39  ;;  %v3866_v51 = vcombine.low %v69_v40, %v73_v41 }
   0xe   :  { %2455 = vmatpush1.bf16.msra.mxu0 %v3840_v26  ;;  %2619 = vmatpush1.bf16.msra.mxu1 %v3842_v27  ;;  %v80_v47 = vld [vmem:[%s6020_s1 + $0x1a0] sm:$0xff]  ;;  %v81_v49 = vld [vmem:[%s6020_s1 + $0x1a8] sm:$0xff] }
   0xf   :  { %2456 = vmatprep.subr.bf16.mxu0 %v3849_v28  ;;  %2620 = vmatprep.subr.bf16.mxu1 %v3851_v29  ;;  %v3873_v52 = vcombine.high %v76_v46, %v80_v47  ;;  %v4630_v53 = vld [vmem:[%s6021_s0] sm:$0xff]  ;;  %v3875_v54 = vcombine.high %v77_v48, %v81_v49  ;;  %v85_v58 = vld [vmem:[%s6020_s1 + $0x1c8] sm:$0xff]  ;;  %v3872_v60 = vcombine.low %v76_v46, %v80_v47 }
  0x10   :  { %v84_v55 = vld [vmem:[%s6020_s1 + $0x1c0] sm:$0xff]  ;;  %v4640_v57 = vcombine.high %v4630_v53, %v4630_v53  ;;  %v89_v59 = vld [vmem:[%s6020_s1 + $0x1e8] sm:$0xff]  ;;  %v3874_v61 = vcombine.low %v77_v48, %v81_v49 }
  0x11   :  { %v88_v56 = vld [vmem:[%s6020_s1 + $0x1e0] sm:$0xff]  ;;  %v3883_v63 = vcombine.high %v85_v58, %v89_v59  ;;  %v93_v2 = vld [vmem:[%s6020_s1 + $0x208] sm:$0xff]  ;;  %v3882_v5 = vcombine.low %v85_v58, %v89_v59 }
  0x12   :  { %2457 = vmatpush1.bf16.msra.mxu0 %v3848_v34  ;;  %2621 = vmatpush1.bf16.msra.mxu1 %v3850_v35  ;;  %v3881_v62 = vcombine.high %v84_v55, %v88_v56  ;;  %v92_v0 = vld [vmem:[%s6020_s1 + $0x200] sm:$0xff]  ;;  %v97_v3 = vld [vmem:[%s6020_s1 + $0x228] sm:$0xff]  ;;  %v3880_v4 = vcombine.low %v84_v55, %v88_v56 }
  0x13   :  { %2458 = vmatprep.subr.bf16.mxu0 %v3857_v36  ;;  %2622 = vmatprep.subr.bf16.mxu1 %v3859_v37  ;;  %v96_v1 = vld [vmem:[%s6020_s1 + $0x220] sm:$0xff]  ;;  %v3891_v7 = vcombine.high %v93_v2, %v97_v3  ;;  %v101_v10 = vld [vmem:[%s6020_s1 + $0x248] sm:$0xff]  ;;  %v3890_v13 = vcombine.low %v93_v2, %v97_v3 }
  0x14   :  { %2482 = vmatprep.mubr.bf16.mxu0 %v4640_v57  ;;  %2646 = vmatprep.mubr.bf16.mxu1 %v4640_v57  ;;  %v3889_v6 = vcombine.high %v92_v0, %v96_v1  ;;  %v100_v8 = vld [vmem:[%s6020_s1 + $0x240] sm:$0xff]  ;;  %v105_v11 = vld [vmem:[%s6020_s1 + $0x268] sm:$0xff]  ;;  %v3888_v12 = vcombine.low %v92_v0, %v96_v1 }
  0x15   :  { %v104_v9 = vld [vmem:[%s6020_s1 + $0x260] sm:$0xff]  ;;  %v3899_v15 = vcombine.high %v101_v10, %v105_v11  ;;  %v109_v18 = vld [vmem:[%s6020_s1 + $0x288] sm:$0xff]  ;;  %v3898_v21 = vcombine.low %v101_v10, %v105_v11 }
  0x16   :  { %2459 = vmatpush1.bf16.msra.mxu0 %v3856_v42  ;;  %2623 = vmatpush1.bf16.msra.mxu1 %v3858_v43  ;;  %v3897_v14 = vcombine.high %v100_v8, %v104_v9  ;;  %v108_v16 = vld [vmem:[%s6020_s1 + $0x280] sm:$0xff]  ;;  %v113_v19 = vld [vmem:[%s6020_s1 + $0x2a8] sm:$0xff]  ;;  %v3896_v20 = vcombine.low %v100_v8, %v104_v9 }
  0x17   :  { %2460 = vmatprep.subr.bf16.mxu0 %v3865_v44  ;;  %2624 = vmatprep.subr.bf16.mxu1 %v3867_v45  ;;  %v112_v17 = vld [vmem:[%s6020_s1 + $0x2a0] sm:$0xff]  ;;  %v3907_v23 = vcombine.high %v109_v18, %v113_v19  ;;  %v117_v26 = vld [vmem:[%s6020_s1 + $0x2c8] sm:$0xff]  ;;  %v3906_v29 = vcombine.low %v109_v18, %v113_v19 }
  0x18   :  { %v3905_v22 = vcombine.high %v108_v16, %v112_v17  ;;  %v116_v24 = vld [vmem:[%s6020_s1 + $0x2c0] sm:$0xff]  ;;  %v121_v27 = vld [vmem:[%s6020_s1 + $0x2e8] sm:$0xff]  ;;  %v3904_v28 = vcombine.low %v108_v16, %v112_v17 }
  0x19   :  { %v120_v25 = vld [vmem:[%s6020_s1 + $0x2e0] sm:$0xff]  ;;  %v3915_v31 = vcombine.high %v117_v26, %v121_v27  ;;  %v125_v34 = vld [vmem:[%s6020_s1 + $0x308] sm:$0xff]  ;;  %v3914_v37 = vcombine.low %v117_v26, %v121_v27 }
  0x1a   :  { %2461 = vmatpush1.bf16.msra.mxu0 %v3864_v50  ;;  %2625 = vmatpush1.bf16.msra.mxu1 %v3866_v51  ;;  %v3913_v30 = vcombine.high %v116_v24, %v120_v25  ;;  %v124_v32 = vld [vmem:[%s6020_s1 + $0x300] sm:$0xff]  ;;  %v129_v35 = vld [vmem:[%s6020_s1 + $0x328] sm:$0xff]  ;;  %v3912_v36 = vcombine.low %v116_v24, %v120_v25 }
  0x1b   :  { %2462 = vmatprep.subr.bf16.mxu0 %v3873_v52  ;;  %2626 = vmatprep.subr.bf16.mxu1 %v3875_v54  ;;  %v128_v33 = vld [vmem:[%s6020_s1 + $0x320] sm:$0xff]  ;;  %v3923_v39 = vcombine.high %v125_v34, %v129_v35  ;;  %v133_v42 = vld [vmem:[%s6020_s1 + $0x348] sm:$0xff]  ;;  %v3922_v45 = vcombine.low %v125_v34, %v129_v35 }
  0x1c   :  { %v3921_v38 = vcombine.high %v124_v32, %v128_v33  ;;  %v132_v40 = vld [vmem:[%s6020_s1 + $0x340] sm:$0xff]  ;;  %v137_v43 = vld [vmem:[%s6020_s1 + $0x368] sm:$0xff]  ;;  %v3920_v44 = vcombine.low %v124_v32, %v128_v33 }
  0x1d   :  { %v136_v41 = vld [vmem:[%s6020_s1 + $0x360] sm:$0xff]  ;;  %v3931_v47 = vcombine.high %v133_v42, %v137_v43  ;;  %v141_v50 = vld [vmem:[%s6020_s1 + $0x388] sm:$0xff]  ;;  %v3930_v54 = vcombine.low %v133_v42, %v137_v43 }
  0x1e   :  { %2463 = vmatpush1.bf16.msra.mxu0 %v3872_v60  ;;  %2627 = vmatpush1.bf16.msra.mxu1 %v3874_v61  ;;  %v3929_v46 = vcombine.high %v132_v40, %v136_v41  ;;  %v140_v48 = vld [vmem:[%s6020_s1 + $0x380] sm:$0xff]  ;;  %v145_v51 = vld [vmem:[%s6020_s1 + $0x3a8] sm:$0xff]  ;;  %v3928_v52 = vcombine.low %v132_v40, %v136_v41 }
  0x1f   :  { %2464 = vmatprep.subr.bf16.mxu0 %v3881_v62  ;;  %2628 = vmatprep.subr.bf16.mxu1 %v3883_v63  ;;  %v144_v49 = vld [vmem:[%s6020_s1 + $0x3a0] sm:$0xff]  ;;  %v3939_v56 = vcombine.high %v141_v50, %v145_v51  ;;  %v149_v60 = vld [vmem:[%s6020_s1 + $0x3c8] sm:$0xff]  ;;  %v3938_v63 = vcombine.low %v141_v50, %v145_v51 }
  0x20   :  { %v3937_v55 = vcombine.high %v140_v48, %v144_v49  ;;  %v148_v58 = vld [vmem:[%s6020_s1 + $0x3c0] sm:$0xff]  ;;  %v153_v61 = vld [vmem:[%s6020_s1 + $0x3e8] sm:$0xff]  ;;  %v3936_v62 = vcombine.low %v140_v48, %v144_v49 }
  0x21   :  { %v152_v59 = vld [vmem:[%s6020_s1 + $0x3e0] sm:$0xff]  ;;  %v3947_v1 = vcombine.high %v149_v60, %v153_v61 }
  0x22   :  { %2465 = vmatpush1.bf16.msra.mxu0 %v3880_v4  ;;  %2629 = vmatpush1.bf16.msra.mxu1 %v3882_v5  ;;  %v3945_v0 = vcombine.high %v148_v58, %v152_v59  ;;  %v156_v2 = vld [vmem:[%s6020_s1 + $0x400] sm:$0xff]  ;;  %v157_v4 = vld [vmem:[%s6020_s1 + $0x408] sm:$0xff] }
  0x23   :  { %2466 = vmatprep.subr.bf16.mxu0 %v3889_v6  ;;  %2630 = vmatprep.subr.bf16.mxu1 %v3891_v7  ;;  %v160_v3 = vld [vmem:[%s6020_s1 + $0x420] sm:$0xff]  ;;  %v161_v5 = vld [vmem:[%s6020_s1 + $0x428] sm:$0xff]  ;;  %v3944_v6 = vcombine.low %v148_v58, %v152_v59  ;;  %v3946_v7 = vcombine.low %v149_v60, %v153_v61 }
  0x24   :  { %v3953_v8 = vcombine.high %v156_v2, %v160_v3  ;;  %v3955_v9 = vcombine.high %v157_v4, %v161_v5  ;;  %v164_v10 = vld [vmem:[%s6020_s1 + $0x440] sm:$0xff]  ;;  %v3952_v16 = vcombine.low %v156_v2, %v160_v3  ;;  %v3954_v17 = vcombine.low %v157_v4, %v161_v5 }
  0x25   :  { %v168_v11 = vld [vmem:[%s6020_s1 + $0x460] sm:$0xff] }
  0x26   :  { %2467 = vmatpush1.bf16.msra.mxu0 %v3888_v12  ;;  %2631 = vmatpush1.bf16.msra.mxu1 %v3890_v13  ;;  %v4766_v12 = vcombine.low %v4630_v53, %v4630_v53  ;;  %v165_v13 = vld [vmem:[%s6020_s1 + $0x448] sm:$0xff]  ;;  %v3961_v53 = vcombine.high %v164_v10, %v168_v11  ;;  %v172_v19 = vld [vmem:[%s6020_s1 + $0x480] sm:$0xff]  ;;  %v3960_v24 = vcombine.low %v164_v10, %v168_v11 }
  0x27   :  { %2468 = vmatprep.subr.bf16.mxu0 %v3897_v14  ;;  %2632 = vmatprep.subr.bf16.mxu1 %v3899_v15  ;;  %v169_v14 = vld [vmem:[%s6020_s1 + $0x468] sm:$0xff] }
  0x28   :  { %v4777_v15 = vld [vmem:[%s6021_s0 + $0x8] sm:$0xff]  ;;  %v3963_v18 = vcombine.high %v165_v13, %v169_v14  ;;  %v3962_v25 = vcombine.low %v165_v13, %v169_v14 }
  0x2a   :  { %2469 = vmatpush1.bf16.msra.mxu0 %v3896_v20  ;;  %2633 = vmatpush1.bf16.msra.mxu1 %v3898_v21  ;;  %v176_v20 = vld [vmem:[%s6020_s1 + $0x4a0] sm:$0xff]  ;;  %v4787_v21 = vcombine.high %v4777_v15, %v4777_v15 }
  0x2b   :  { %2470 = vmatprep.subr.bf16.mxu0 %v3905_v22  ;;  %2634 = vmatprep.subr.bf16.mxu1 %v3907_v23  ;;  %v173_v22 = vld [vmem:[%s6020_s1 + $0x488] sm:$0xff]  ;;  %v3969_v26 = vcombine.high %v172_v19, %v176_v20  ;;  %v3968_v32 = vcombine.low %v172_v19, %v176_v20 }
  0x2c   :  { %v177_v23 = vld [vmem:[%s6020_s1 + $0x4a8] sm:$0xff] }
  0x2d   :  { %v3971_v27 = vcombine.high %v173_v22, %v177_v23  ;;  %v3970_v33 = vcombine.low %v173_v22, %v177_v23 }
  0x2e   :  { %2471 = vmatpush1.bf16.msra.mxu0 %v3904_v28  ;;  %2635 = vmatpush1.bf16.msra.mxu1 %v3906_v29  ;;  %v180_v28 = vld [vmem:[%s6020_s1 + $0x4c0] sm:$0xff] }
  0x2f   :  { %2472 = vmatprep.subr.bf16.mxu0 %v3913_v30  ;;  %2636 = vmatprep.subr.bf16.mxu1 %v3915_v31  ;;  %v184_v29 = vld [vmem:[%s6020_s1 + $0x4e0] sm:$0xff]  ;;  %v181_v30 = vld [vmem:[%s6020_s1 + $0x4c8] sm:$0xff] }
  0x30   :  { %v185_v31 = vld [vmem:[%s6020_s1 + $0x4e8] sm:$0xff]  ;;  %v3977_v34 = vcombine.high %v180_v28, %v184_v29  ;;  %v3976_v40 = vcombine.low %v180_v28, %v184_v29 }
  0x31   :  { %v3979_v35 = vcombine.high %v181_v30, %v185_v31  ;;  %v3978_v41 = vcombine.low %v181_v30, %v185_v31 }
  0x32   :  { %2473 = vmatpush1.bf16.msra.mxu0 %v3912_v36  ;;  %2637 = vmatpush1.bf16.msra.mxu1 %v3914_v37  ;;  %v188_v36 = vld [vmem:[%s6020_s1 + $0x500] sm:$0xff] }
  0x33   :  { %2474 = vmatprep.subr.bf16.mxu0 %v3921_v38  ;;  %2638 = vmatprep.subr.bf16.mxu1 %v3923_v39  ;;  %v192_v37 = vld [vmem:[%s6020_s1 + $0x520] sm:$0xff]  ;;  %v189_v38 = vld [vmem:[%s6020_s1 + $0x508] sm:$0xff] }
  0x34   :  { %v193_v39 = vld [vmem:[%s6020_s1 + $0x528] sm:$0xff]  ;;  %v3985_v42 = vcombine.high %v188_v36, %v192_v37  ;;  %v3984_v48 = vcombine.low %v188_v36, %v192_v37 }
  0x35   :  { %v3987_v43 = vcombine.high %v189_v38, %v193_v39  ;;  %v3986_v49 = vcombine.low %v189_v38, %v193_v39 }
  0x36   :  { %2475 = vmatpush1.bf16.msra.mxu0 %v3920_v44  ;;  %2639 = vmatpush1.bf16.msra.mxu1 %v3922_v45  ;;  %v196_v44 = vld [vmem:[%s6020_s1 + $0x540] sm:$0xff] }
  0x37   :  { %2476 = vmatprep.subr.bf16.mxu0 %v3929_v46  ;;  %2640 = vmatprep.subr.bf16.mxu1 %v3931_v47  ;;  %v200_v45 = vld [vmem:[%s6020_s1 + $0x560] sm:$0xff]  ;;  %v197_v46 = vld [vmem:[%s6020_s1 + $0x548] sm:$0xff] }
  0x38   :  { %v201_v47 = vld [vmem:[%s6020_s1 + $0x568] sm:$0xff]  ;;  %v3993_v50 = vcombine.high %v196_v44, %v200_v45  ;;  %v3992_v58 = vcombine.low %v196_v44, %v200_v45 }
  0x39   :  { %v3995_v51 = vcombine.high %v197_v46, %v201_v47  ;;  %v3994_v59 = vcombine.low %v197_v46, %v201_v47 }
  0x3a   :  { %2477 = vmatpush1.bf16.msra.mxu0 %v3928_v52  ;;  %2641 = vmatpush1.bf16.msra.mxu1 %v3930_v54  ;;  %v204_v52 = vld [vmem:[%s6020_s1 + $0x580] sm:$0xff] }
  0x3b   :  { %2478 = vmatprep.subr.bf16.mxu0 %v3937_v55  ;;  %2642 = vmatprep.subr.bf16.mxu1 %v3939_v56  ;;  %v208_v54 = vld [vmem:[%s6020_s1 + $0x5a0] sm:$0xff]  ;;  %v205_v55 = vld [vmem:[%s6020_s1 + $0x588] sm:$0xff] }
  0x3c   :  { %v209_v56 = vld [vmem:[%s6020_s1 + $0x5a8] sm:$0xff]  ;;  %v4001_v60 = vcombine.high %v204_v52, %v208_v54  ;;  %v4000_v2 = vcombine.low %v204_v52, %v208_v54 }
  0x3d   :  { %v4003_v61 = vcombine.high %v205_v55, %v209_v56  ;;  %v4002_v3 = vcombine.low %v205_v55, %v209_v56 }
  0x3e   :  { %2479 = vmatpush1.bf16.msra.mxu0 %v3936_v62  ;;  %2643 = vmatpush1.bf16.msra.mxu1 %v3938_v63  ;;  %v212_v62 = vld [vmem:[%s6020_s1 + $0x5c0] sm:$0xff] }
  0x3f   :  { %2480 = vmatprep.subr.bf16.mxu0 %v3945_v0  ;;  %2644 = vmatprep.subr.bf16.mxu1 %v3947_v1  ;;  %v216_v63 = vld [vmem:[%s6020_s1 + $0x5e0] sm:$0xff]  ;;  %v213_v0 = vld [vmem:[%s6020_s1 + $0x5c8] sm:$0xff] }
  0x40   :  { %v217_v1 = vld [vmem:[%s6020_s1 + $0x5e8] sm:$0xff]  ;;  %v4009_v4 = vcombine.high %v212_v62, %v216_v63  ;;  %v4008_v10 = vcombine.low %v212_v62, %v216_v63 }
  0x41   :  { %v4011_v5 = vcombine.high %v213_v0, %v217_v1  ;;  %v4010_v11 = vcombine.low %v213_v0, %v217_v1 }
  0x42   :  { %2481 = vmatpush1.bf16.msra.mxu0 %v3944_v6  ;;  %2645 = vmatpush1.bf16.msra.mxu1 %v3946_v7  ;;  %v220_v6 = vld [vmem:[%s6020_s1 + $0x600] sm:$0xff] }
  0x43   :  { %2491 = vmatprep.subr.bf16.mxu0 %v3953_v8  ;;  %2655 = vmatprep.subr.bf16.mxu1 %v3955_v9  ;;  %v224_v7 = vld [vmem:[%s6020_s1 + $0x620] sm:$0xff]  ;;  %v221_v8 = vld [vmem:[%s6020_s1 + $0x608] sm:$0xff] }
  0x44   :  { %v225_v9 = vld [vmem:[%s6020_s1 + $0x628] sm:$0xff]  ;;  %v4017_v13 = vcombine.high %v220_v6, %v224_v7  ;;  %v4016_v19 = vcombine.low %v220_v6, %v224_v7 }
  0x45   :  { %2483 = vmatmul.mubr.bf16.vlgmr.msra.gmra.mrb[0].mxu0 %v4766_v12  ;;  %2647 = vmatmul.mubr.bf16.vlgmr.msra.gmra.mrb[0].mxu1 %v4766_v12  ;;  %v4019_v14 = vcombine.high %v221_v8, %v225_v9  ;;  %v4018_v20 = vcombine.low %v221_v8, %v225_v9 }
  0x46   :  { %2492 = vmatpush1.bf16.msra.mxu0 %v3952_v16  ;;  %2656 = vmatpush1.bf16.msra.mxu1 %v3954_v17  ;;  %v228_v16 = vld [vmem:[%s6020_s1 + $0x640] sm:$0xff] }
  0x47   :  { %2493 = vmatprep.subr.bf16.mxu0 %v3961_v53  ;;  %2657 = vmatprep.subr.bf16.mxu1 %v3963_v18  ;;  %v232_v17 = vld [vmem:[%s6020_s1 + $0x660] sm:$0xff]  ;;  %v229_v53 = vld [vmem:[%s6020_s1 + $0x648] sm:$0xff] }
  0x48   :  { %2523 = vmatprep.mubr.bf16.mxu0 %v4787_v21  ;;  %2687 = vmatprep.mubr.bf16.mxu1 %v4787_v21  ;;  %v233_v18 = vld [vmem:[%s6020_s1 + $0x668] sm:$0xff]  ;;  %v4025_v22 = vcombine.high %v228_v16, %v232_v17  ;;  %v4024_v28 = vcombine.low %v228_v16, %v232_v17 }
  0x49   :  { %v4027_v23 = vcombine.high %v229_v53, %v233_v18  ;;  %v4026_v29 = vcombine.low %v229_v53, %v233_v18 }
  0x4a   :  { %2494 = vmatpush1.bf16.msra.mxu0 %v3960_v24  ;;  %2658 = vmatpush1.bf16.msra.mxu1 %v3962_v25  ;;  %v236_v24 = vld [vmem:[%s6020_s1 + $0x680] sm:$0xff] }
  0x4b   :  { %2495 = vmatprep.subr.bf16.mxu0 %v3969_v26  ;;  %2659 = vmatprep.subr.bf16.mxu1 %v3971_v27  ;;  %v240_v25 = vld [vmem:[%s6020_s1 + $0x6a0] sm:$0xff]  ;;  %v237_v26 = vld [vmem:[%s6020_s1 + $0x688] sm:$0xff] }
  0x4c   :  { %v241_v27 = vld [vmem:[%s6020_s1 + $0x6a8] sm:$0xff]  ;;  %v4033_v30 = vcombine.high %v236_v24, %v240_v25  ;;  %v4032_v36 = vcombine.low %v236_v24, %v240_v25  ;;  %v4986_v25 = vld [vmem:[%s6021_s0 + $0x10] sm:$0xff] }
  0x4d   :  { %v4035_v31 = vcombine.high %v237_v26, %v241_v27  ;;  %v4034_v37 = vcombine.low %v237_v26, %v241_v27  ;;  %v297_v24 = vld [vmem:[%s6020_s1 + $0x868] sm:$0xff] }
  0x4e   :  { %2496 = vmatpush1.bf16.msra.mxu0 %v3968_v32  ;;  %2660 = vmatpush1.bf16.msra.mxu1 %v3970_v33  ;;  %v244_v32 = vld [vmem:[%s6020_s1 + $0x6c0] sm:$0xff] }
  0x4f   :  { %2497 = vmatprep.subr.bf16.mxu0 %v3977_v34  ;;  %2661 = vmatprep.subr.bf16.mxu1 %v3979_v35  ;;  %v248_v33 = vld [vmem:[%s6020_s1 + $0x6e0] sm:$0xff]  ;;  %v245_v34 = vld [vmem:[%s6020_s1 + $0x6c8] sm:$0xff] }
  0x50   :  { %v249_v35 = vld [vmem:[%s6020_s1 + $0x6e8] sm:$0xff]  ;;  %v4041_v38 = vcombine.high %v244_v32, %v248_v33  ;;  %v4040_v44 = vcombine.low %v244_v32, %v248_v33 }
  0x51   :  { %v4043_v39 = vcombine.high %v245_v34, %v249_v35  ;;  %v4042_v45 = vcombine.low %v245_v34, %v249_v35  ;;  %v301_v32 = vld [vmem:[%s6020_s1 + $0x888] sm:$0xff] }
  0x52   :  { %2498 = vmatpush1.bf16.msra.mxu0 %v3976_v40  ;;  %2662 = vmatpush1.bf16.msra.mxu1 %v3978_v41  ;;  %v252_v40 = vld [vmem:[%s6020_s1 + $0x700] sm:$0xff]  ;;  %v305_v33 = vld [vmem:[%s6020_s1 + $0x8a8] sm:$0xff] }
  0x53   :  { %2499 = vmatprep.subr.bf16.mxu0 %v3985_v42  ;;  %2663 = vmatprep.subr.bf16.mxu1 %v3987_v43  ;;  %v256_v41 = vld [vmem:[%s6020_s1 + $0x720] sm:$0xff]  ;;  %v253_v42 = vld [vmem:[%s6020_s1 + $0x708] sm:$0xff] }
  0x54   :  { %v257_v43 = vld [vmem:[%s6020_s1 + $0x728] sm:$0xff]  ;;  %v4049_v46 = vcombine.high %v252_v40, %v256_v41  ;;  %v4048_v52 = vcombine.low %v252_v40, %v256_v41 }
  0x55   :  { %v4051_v47 = vcombine.high %v253_v42, %v257_v43  ;;  %v4050_v54 = vcombine.low %v253_v42, %v257_v43  ;;  %v309_v40 = vld [vmem:[%s6020_s1 + $0x8c8] sm:$0xff]  ;;  %v4098_v43 = vcombine.low %v301_v32, %v305_v33 }
  0x56   :  { %2500 = vmatpush1.bf16.msra.mxu0 %v3984_v48  ;;  %2664 = vmatpush1.bf16.msra.mxu1 %v3986_v49  ;;  %v260_v48 = vld [vmem:[%s6020_s1 + $0x740] sm:$0xff]  ;;  %v313_v41 = vld [vmem:[%s6020_s1 + $0x8e8] sm:$0xff] }
  0x57   :  { %2501 = vmatprep.subr.bf16.mxu0 %v3993_v50  ;;  %2665 = vmatprep.subr.bf16.mxu1 %v3995_v51  ;;  %v264_v49 = vld [vmem:[%s6020_s1 + $0x760] sm:$0xff]  ;;  %v261_v50 = vld [vmem:[%s6020_s1 + $0x748] sm:$0xff] }
  0x58   :  { %v265_v51 = vld [vmem:[%s6020_s1 + $0x768] sm:$0xff]  ;;  %v4057_v55 = vcombine.high %v260_v48, %v264_v49  ;;  %v4056_v62 = vcombine.low %v260_v48, %v264_v49 }
  0x59   :  { %v4059_v56 = vcombine.high %v261_v50, %v265_v51  ;;  %v4058_v63 = vcombine.low %v261_v50, %v265_v51  ;;  %v317_v48 = vld [vmem:[%s6020_s1 + $0x908] sm:$0xff]  ;;  %v4106_v51 = vcombine.low %v309_v40, %v313_v41 }
  0x5a   :  { %2502 = vmatpush1.bf16.msra.mxu0 %v3992_v58  ;;  %2666 = vmatpush1.bf16.msra.mxu1 %v3994_v59  ;;  %v268_v58 = vld [vmem:[%s6020_s1 + $0x780] sm:$0xff]  ;;  %v321_v49 = vld [vmem:[%s6020_s1 + $0x928] sm:$0xff] }
  0x5b   :  { %2503 = vmatprep.subr.bf16.mxu0 %v4001_v60  ;;  %2667 = vmatprep.subr.bf16.mxu1 %v4003_v61  ;;  %v272_v59 = vld [vmem:[%s6020_s1 + $0x7a0] sm:$0xff]  ;;  %v269_v60 = vld [vmem:[%s6020_s1 + $0x788] sm:$0xff] }
  0x5c   :  { %v273_v61 = vld [vmem:[%s6020_s1 + $0x7a8] sm:$0xff]  ;;  %v4065_v0 = vcombine.high %v268_v58, %v272_v59  ;;  %v4064_v6 = vcombine.low %v268_v58, %v272_v59 }
  0x5d   :  { %v4067_v1 = vcombine.high %v269_v60, %v273_v61  ;;  %v4066_v7 = vcombine.low %v269_v60, %v273_v61  ;;  %v325_v58 = vld [vmem:[%s6020_s1 + $0x948] sm:$0xff]  ;;  %v4114_v61 = vcombine.low %v317_v48, %v321_v49 }
  0x5e   :  { %2504 = vmatpush1.bf16.msra.mxu0 %v4000_v2  ;;  %2668 = vmatpush1.bf16.msra.mxu1 %v4002_v3  ;;  %v276_v2 = vld [vmem:[%s6020_s1 + $0x7c0] sm:$0xff]  ;;  %v329_v59 = vld [vmem:[%s6020_s1 + $0x968] sm:$0xff] }
  0x5f   :  { %2505 = vmatprep.subr.bf16.mxu0 %v4009_v4  ;;  %2669 = vmatprep.subr.bf16.mxu1 %v4011_v5  ;;  %v280_v3 = vld [vmem:[%s6020_s1 + $0x7e0] sm:$0xff]  ;;  %v277_v4 = vld [vmem:[%s6020_s1 + $0x7c8] sm:$0xff] }
  0x60   :  { %v281_v5 = vld [vmem:[%s6020_s1 + $0x7e8] sm:$0xff]  ;;  %v4073_v8 = vcombine.high %v276_v2, %v280_v3  ;;  %v4072_v16 = vcombine.low %v276_v2, %v280_v3 }
  0x61   :  { %v4075_v9 = vcombine.high %v277_v4, %v281_v5  ;;  %v4074_v17 = vcombine.low %v277_v4, %v281_v5  ;;  %v333_v2 = vld [vmem:[%s6020_s1 + $0x988] sm:$0xff]  ;;  %v4122_v5 = vcombine.low %v325_v58, %v329_v59 }
  0x62   :  { %2506 = vmatpush1.bf16.msra.mxu0 %v4008_v10  ;;  %2670 = vmatpush1.bf16.msra.mxu1 %v4010_v11  ;;  %v284_v10 = vld [vmem:[%s6020_s1 + $0x800] sm:$0xff]  ;;  %v337_v3 = vld [vmem:[%s6020_s1 + $0x9a8] sm:$0xff] }
  0x63   :  { %2507 = vmatprep.subr.bf16.mxu0 %v4017_v13  ;;  %2671 = vmatprep.subr.bf16.mxu1 %v4019_v14  ;;  %v288_v11 = vld [vmem:[%s6020_s1 + $0x820] sm:$0xff]  ;;  %v285_v13 = vld [vmem:[%s6020_s1 + $0x808] sm:$0xff] }
  0x64   :  { %v289_v14 = vld [vmem:[%s6020_s1 + $0x828] sm:$0xff]  ;;  %v4081_v53 = vcombine.high %v284_v10, %v288_v11  ;;  %v4080_v26 = vcombine.low %v284_v10, %v288_v11 }
  0x65   :  { %v4083_v18 = vcombine.high %v285_v13, %v289_v14  ;;  %v4082_v27 = vcombine.low %v285_v13, %v289_v14  ;;  %v341_v10 = vld [vmem:[%s6020_s1 + $0x9c8] sm:$0xff]  ;;  %v4130_v14 = vcombine.low %v333_v2, %v337_v3 }
  0x66   :  { %2508 = vmatpush1.bf16.msra.mxu0 %v4016_v19  ;;  %2672 = vmatpush1.bf16.msra.mxu1 %v4018_v20  ;;  %v292_v19 = vld [vmem:[%s6020_s1 + $0x840] sm:$0xff]  ;;  %v345_v11 = vld [vmem:[%s6020_s1 + $0x9e8] sm:$0xff] }
  0x67   :  { %2509 = vmatprep.subr.bf16.mxu0 %v4025_v22  ;;  %2673 = vmatprep.subr.bf16.mxu1 %v4027_v23  ;;  %v296_v20 = vld [vmem:[%s6020_s1 + $0x860] sm:$0xff]  ;;  %v4975_v22 = vcombine.low %v4777_v15, %v4777_v15  ;;  %v293_v23 = vld [vmem:[%s6020_s1 + $0x848] sm:$0xff] }
  0x68   :  { %v4089_v15 = vcombine.high %v292_v19, %v296_v20  ;;  %v4088_v34 = vcombine.low %v292_v19, %v296_v20  ;;  %v4090_v35 = vcombine.low %v293_v23, %v297_v24  ;;  %v349_v19 = vld [vmem:[%s6020_s1 + $0xa08] sm:$0xff] }
  0x69   :  { %v353_v20 = vld [vmem:[%s6020_s1 + $0xa28] sm:$0xff] }
  0x6a   :  { %2510 = vmatpush1.bf16.msra.mxu0 %v4024_v28  ;;  %2674 = vmatpush1.bf16.msra.mxu1 %v4026_v29  ;;  %v4091_v28 = vcombine.high %v293_v23, %v297_v24  ;;  %v300_v29 = vld [vmem:[%s6020_s1 + $0x880] sm:$0xff]  ;;  %v4138_v24 = vcombine.low %v341_v10, %v345_v11 }
  0x6b   :  { %2511 = vmatprep.subr.bf16.mxu0 %v4033_v30  ;;  %2675 = vmatprep.subr.bf16.mxu1 %v4035_v31  ;;  %v304_v30 = vld [vmem:[%s6020_s1 + $0x8a0] sm:$0xff]  ;;  %v4996_v31 = vcombine.high %v4986_v25, %v4986_v25 }
  0x6c   :  { %v4096_v42 = vcombine.low %v300_v29, %v304_v30 }
  0x6e   :  { %2512 = vmatpush1.bf16.msra.mxu0 %v4032_v36  ;;  %2676 = vmatpush1.bf16.msra.mxu1 %v4034_v37  ;;  %v4097_v36 = vcombine.high %v300_v29, %v304_v30  ;;  %v4099_v37 = vcombine.high %v301_v32, %v305_v33  ;;  %v357_v29 = vld [vmem:[%s6020_s1 + $0xa48] sm:$0xff]  ;;  %v4146_v33 = vcombine.low %v349_v19, %v353_v20 }
  0x6f   :  { %2513 = vmatprep.subr.bf16.mxu0 %v4041_v38  ;;  %2677 = vmatprep.subr.bf16.mxu1 %v4043_v39  ;;  %v308_v38 = vld [vmem:[%s6020_s1 + $0x8c0] sm:$0xff]  ;;  %v361_v30 = vld [vmem:[%s6020_s1 + $0xa68] sm:$0xff] }
  0x70   :  { %v312_v39 = vld [vmem:[%s6020_s1 + $0x8e0] sm:$0xff] }
  0x71   :  { %v4104_v50 = vcombine.low %v308_v38, %v312_v39 }
  0x72   :  { %2514 = vmatpush1.bf16.msra.mxu0 %v4040_v44  ;;  %2678 = vmatpush1.bf16.msra.mxu1 %v4042_v45  ;;  %v4105_v44 = vcombine.high %v308_v38, %v312_v39  ;;  %v4107_v45 = vcombine.high %v309_v40, %v313_v41  ;;  %v365_v38 = vld [vmem:[%s6020_s1 + $0xa88] sm:$0xff]  ;;  %v4154_v41 = vcombine.low %v357_v29, %v361_v30 }
  0x73   :  { %2515 = vmatprep.subr.bf16.mxu0 %v4049_v46  ;;  %2679 = vmatprep.subr.bf16.mxu1 %v4051_v47  ;;  %v316_v46 = vld [vmem:[%s6020_s1 + $0x900] sm:$0xff]  ;;  %v369_v39 = vld [vmem:[%s6020_s1 + $0xaa8] sm:$0xff] }
  0x74   :  { %v320_v47 = vld [vmem:[%s6020_s1 + $0x920] sm:$0xff] }
  0x75   :  { %v4112_v60 = vcombine.low %v316_v46, %v320_v47 }
  0x76   :  { %2516 = vmatpush1.bf16.msra.mxu0 %v4048_v52  ;;  %2680 = vmatpush1.bf16.msra.mxu1 %v4050_v54  ;;  %v4113_v52 = vcombine.high %v316_v46, %v320_v47  ;;  %v4115_v54 = vcombine.high %v317_v48, %v321_v49  ;;  %v373_v46 = vld [vmem:[%s6020_s1 + $0xac8] sm:$0xff]  ;;  %v4162_v49 = vcombine.low %v365_v38, %v369_v39 }
  0x77   :  { %2517 = vmatprep.subr.bf16.mxu0 %v4057_v55  ;;  %2681 = vmatprep.subr.bf16.mxu1 %v4059_v56  ;;  %v324_v55 = vld [vmem:[%s6020_s1 + $0x940] sm:$0xff]  ;;  %v377_v47 = vld [vmem:[%s6020_s1 + $0xae8] sm:$0xff] }
  0x78   :  { %v328_v56 = vld [vmem:[%s6020_s1 + $0x960] sm:$0xff] }
  0x79   :  { %v4120_v4 = vcombine.low %v324_v55, %v328_v56 }
  0x7a   :  { %2518 = vmatpush1.bf16.msra.mxu0 %v4056_v62  ;;  %2682 = vmatpush1.bf16.msra.mxu1 %v4058_v63  ;;  %v4121_v62 = vcombine.high %v324_v55, %v328_v56  ;;  %v4123_v63 = vcombine.high %v325_v58, %v329_v59  ;;  %v381_v55 = vld [vmem:[%s6020_s1 + $0xb08] sm:$0xff]  ;;  %v4170_v59 = vcombine.low %v373_v46, %v377_v47 }
  0x7b   :  { %2519 = vmatprep.subr.bf16.mxu0 %v4065_v0  ;;  %2683 = vmatprep.subr.bf16.mxu1 %v4067_v1  ;;  %v332_v0 = vld [vmem:[%s6020_s1 + $0x980] sm:$0xff]  ;;  %v385_v56 = vld [vmem:[%s6020_s1 + $0xb28] sm:$0xff] }
  0x7c   :  { %v336_v1 = vld [vmem:[%s6020_s1 + $0x9a0] sm:$0xff] }
  0x7d   :  { %v4128_v13 = vcombine.low %v332_v0, %v336_v1 }
  0x7e   :  { %2520 = vmatpush1.bf16.msra.mxu0 %v4064_v6  ;;  %2684 = vmatpush1.bf16.msra.mxu1 %v4066_v7  ;;  %v4129_v6 = vcombine.high %v332_v0, %v336_v1  ;;  %v4131_v7 = vcombine.high %v333_v2, %v337_v3  ;;  %v389_v0 = vld [vmem:[%s6020_s1 + $0xb48] sm:$0xff]  ;;  %v4178_v3 = vcombine.low %v381_v55, %v385_v56 }
  0x7f   :  { %2521 = vmatprep.subr.bf16.mxu0 %v4073_v8  ;;  %2685 = vmatprep.subr.bf16.mxu1 %v4075_v9  ;;  %v340_v8 = vld [vmem:[%s6020_s1 + $0x9c0] sm:$0xff]  ;;  %v393_v1 = vld [vmem:[%s6020_s1 + $0xb68] sm:$0xff] }
  0x80   :  { %v344_v9 = vld [vmem:[%s6020_s1 + $0x9e0] sm:$0xff] }
  0x81   :  { %v4136_v23 = vcombine.low %v340_v8, %v344_v9 }
  0x82   :  { %2522 = vmatpush1.bf16.msra.mxu0 %v4072_v16  ;;  %2686 = vmatpush1.bf16.msra.mxu1 %v4074_v17  ;;  %v4137_v16 = vcombine.high %v340_v8, %v344_v9  ;;  %v4139_v17 = vcombine.high %v341_v10, %v345_v11  ;;  %v397_v8 = vld [vmem:[%s6020_s1 + $0xb88] sm:$0xff]  ;;  %v4186_v11 = vcombine.low %v389_v0, %v393_v1 }
  0x83   :  { %2532 = vmatprep.subr.bf16.mxu0 %v4081_v53  ;;  %2696 = vmatprep.subr.bf16.mxu1 %v4083_v18  ;;  %v348_v53 = vld [vmem:[%s6020_s1 + $0xa00] sm:$0xff]  ;;  %v401_v9 = vld [vmem:[%s6020_s1 + $0xba8] sm:$0xff] }
  0x84   :  { %v352_v18 = vld [vmem:[%s6020_s1 + $0xa20] sm:$0xff] }
  0x85   :  { %2524 = vmatmul.mubr.bf16.vlgmr.msra.gmra.mrb[0].mxu0 %v4975_v22  ;;  %2688 = vmatmul.mubr.bf16.vlgmr.msra.gmra.mrb[0].mxu1 %v4975_v22  ;;  %v4144_v32 = vcombine.low %v348_v53, %v352_v18 }
  0x86   :  { %2533 = vmatpush1.bf16.msra.mxu0 %v4080_v26  ;;  %2697 = vmatpush1.bf16.msra.mxu1 %v4082_v27  ;;  %v4145_v26 = vcombine.high %v348_v53, %v352_v18  ;;  %v4147_v27 = vcombine.high %v349_v19, %v353_v20  ;;  %v405_v53 = vld [vmem:[%s6020_s1 + $0xbc8] sm:$0xff]  ;;  %v4194_v20 = vcombine.low %v397_v8, %v401_v9 }
  0x87   :  { %2534 = vmatprep.subr.bf16.mxu0 %v4089_v15  ;;  %2698 = vmatprep.subr.bf16.mxu1 %v4091_v28  ;;  %v356_v15 = vld [vmem:[%s6020_s1 + $0xa40] sm:$0xff]  ;;  %v409_v18 = vld [vmem:[%s6020_s1 + $0xbe8] sm:$0xff] }
  0x88   :  { %2564 = vmatprep.mubr.bf16.mxu0 %v4996_v31  ;;  %2728 = vmatprep.mubr.bf16.mxu1 %v4996_v31  ;;  %v360_v28 = vld [vmem:[%s6020_s1 + $0xa60] sm:$0xff] }
  0x89   :  { %v4152_v40 = vcombine.low %v356_v15, %v360_v28 }
  0x8a   :  { %2535 = vmatpush1.bf16.msra.mxu0 %v4088_v34  ;;  %2699 = vmatpush1.bf16.msra.mxu1 %v4090_v35  ;;  %v4153_v34 = vcombine.high %v356_v15, %v360_v28  ;;  %v4155_v35 = vcombine.high %v357_v29, %v361_v30  ;;  %v413_v15 = vld [vmem:[%s6020_s1 + $0xc08] sm:$0xff]  ;;  %v4202_v30 = vcombine.low %v405_v53, %v409_v18 }
  0x8b   :  { %2536 = vmatprep.subr.bf16.mxu0 %v4097_v36  ;;  %2700 = vmatprep.subr.bf16.mxu1 %v4099_v37  ;;  %v364_v36 = vld [vmem:[%s6020_s1 + $0xa80] sm:$0xff]  ;;  %v417_v28 = vld [vmem:[%s6020_s1 + $0xc28] sm:$0xff] }
  0x8c   :  { %v368_v37 = vld [vmem:[%s6020_s1 + $0xaa0] sm:$0xff] }
  0x8d   :  { %v4160_v48 = vcombine.low %v364_v36, %v368_v37 }
  0x8e   :  { %2537 = vmatpush1.bf16.msra.mxu0 %v4096_v42  ;;  %2701 = vmatpush1.bf16.msra.mxu1 %v4098_v43  ;;  %v4161_v42 = vcombine.high %v364_v36, %v368_v37  ;;  %v4163_v43 = vcombine.high %v365_v38, %v369_v39  ;;  %v34_v36 = vld [vmem:[%s6020_s1 + $0x30] sm:$0xff]  ;;  %v31_v38 = vld [vmem:[%s6020_s1 + $0x18] sm:$0xff] }
  0x8f   :  { %2538 = vmatprep.subr.bf16.mxu0 %v4105_v44  ;;  %2702 = vmatprep.subr.bf16.mxu1 %v4107_v45  ;;  %v372_v44 = vld [vmem:[%s6020_s1 + $0xac0] sm:$0xff]  ;;  %v35_v39 = vld [vmem:[%s6020_s1 + $0x38] sm:$0xff] }
  0x90   :  { %v376_v45 = vld [vmem:[%s6020_s1 + $0xae0] sm:$0xff] }
  0x91   :  { %v4168_v58 = vcombine.low %v372_v44, %v376_v45 }
  0x92   :  { %2539 = vmatpush1.bf16.msra.mxu0 %v4104_v50  ;;  %2703 = vmatpush1.bf16.msra.mxu1 %v4106_v51  ;;  %v4169_v50 = vcombine.high %v372_v44, %v376_v45  ;;  %v4171_v51 = vcombine.high %v373_v46, %v377_v47  ;;  %v42_v44 = vld [vmem:[%s6020_s1 + $0x70] sm:$0xff]  ;;  %v4437_v45 = vld [vmem:[%s6021_s0 + $0x18] ss:$0 sps:$4 sm:$0xff]  }
  0x93   :  { %2540 = vmatprep.subr.bf16.mxu0 %v4113_v52  ;;  %2704 = vmatprep.subr.bf16.mxu1 %v4115_v54  ;;  %v380_v52 = vld [vmem:[%s6020_s1 + $0xb00] sm:$0xff]  ;;  %v39_v46 = vld [vmem:[%s6020_s1 + $0x58] sm:$0xff] }
  0x94   :  { %v384_v54 = vld [vmem:[%s6020_s1 + $0xb20] sm:$0xff]  ;;  %v43_v47 = vld [vmem:[%s6020_s1 + $0x78] sm:$0xff] }
  0x95   :  { %v4176_v2 = vcombine.low %v380_v52, %v384_v54 }
  0x96   :  { %2541 = vmatpush1.bf16.msra.mxu0 %v4112_v60  ;;  %2705 = vmatpush1.bf16.msra.mxu1 %v4114_v61  ;;  %v4177_v60 = vcombine.high %v380_v52, %v384_v54  ;;  %v4179_v61 = vcombine.high %v381_v55, %v385_v56  ;;  %v46_v52 = vld [vmem:[%s6020_s1 + $0x90] sm:$0xff]  ;;  %v47_v55 = vld [vmem:[%s6020_s1 + $0x98] sm:$0xff] }
  0x97   :  { %2542 = vmatprep.subr.bf16.mxu0 %v4121_v62  ;;  %2706 = vmatprep.subr.bf16.mxu1 %v4123_v63  ;;  %v388_v62 = vld [vmem:[%s6020_s1 + $0xb40] sm:$0xff]  ;;  %v50_v54 = vld [vmem:[%s6020_s1 + $0xb0] sm:$0xff]  ;;  %v51_v56 = vld [vmem:[%s6020_s1 + $0xb8] sm:$0xff] }
  0x98   :  { %v392_v63 = vld [vmem:[%s6020_s1 + $0xb60] sm:$0xff] }
  0x99   :  { %v4184_v10 = vcombine.low %v388_v62, %v392_v63 }
  0x9a   :  { %2543 = vmatpush1.bf16.msra.mxu0 %v4120_v4  ;;  %2707 = vmatpush1.bf16.msra.mxu1 %v4122_v5  ;;  %v4185_v4 = vcombine.high %v388_v62, %v392_v63  ;;  %v4187_v5 = vcombine.high %v389_v0, %v393_v1  ;;  %v54_v62 = vld [vmem:[%s6020_s1 + $0xd0] sm:$0xff]  ;;  %v55_v0 = vld [vmem:[%s6020_s1 + $0xd8] sm:$0xff] }
  0x9b   :  { %2544 = vmatprep.subr.bf16.mxu0 %v4129_v6  ;;  %2708 = vmatprep.subr.bf16.mxu1 %v4131_v7  ;;  %v396_v6 = vld [vmem:[%s6020_s1 + $0xb80] sm:$0xff]  ;;  %v58_v63 = vld [vmem:[%s6020_s1 + $0xf0] sm:$0xff]  ;;  %v59_v1 = vld [vmem:[%s6020_s1 + $0xf8] sm:$0xff] }
  0x9c   :  { %v400_v7 = vld [vmem:[%s6020_s1 + $0xba0] sm:$0xff] }
  0x9d   :  { %v4192_v19 = vcombine.low %v396_v6, %v400_v7 }
  0x9e   :  { %2545 = vmatpush1.bf16.msra.mxu0 %v4128_v13  ;;  %2709 = vmatpush1.bf16.msra.mxu1 %v4130_v14  ;;  %v4193_v13 = vcombine.high %v396_v6, %v400_v7  ;;  %v4195_v14 = vcombine.high %v397_v8, %v401_v9  ;;  %v62_v6 = vld [vmem:[%s6020_s1 + $0x110] sm:$0xff]  ;;  %v67_v8 = vld [vmem:[%s6020_s1 + $0x138] sm:$0xff]  ;;  %v3852_v9 = vcombine.low %v54_v62, %v58_v63 }
  0x9f   :  { %2546 = vmatprep.subr.bf16.mxu0 %v4137_v16  ;;  %2710 = vmatprep.subr.bf16.mxu1 %v4139_v17  ;;  %v404_v16 = vld [vmem:[%s6020_s1 + $0xbc0] sm:$0xff]  ;;  %v66_v7 = vld [vmem:[%s6020_s1 + $0x130] sm:$0xff] }
  0xa0   :  { %v408_v17 = vld [vmem:[%s6020_s1 + $0xbe0] sm:$0xff] }
  0xa1   :  { %v4200_v29 = vcombine.low %v404_v16, %v408_v17 }
  0xa2   :  { %2547 = vmatpush1.bf16.msra.mxu0 %v4136_v23  ;;  %2711 = vmatpush1.bf16.msra.mxu1 %v4138_v24  ;;  %v4201_v23 = vcombine.high %v404_v16, %v408_v17  ;;  %v4203_v24 = vcombine.high %v405_v53, %v409_v18  ;;  %v74_v16 = vld [vmem:[%s6020_s1 + $0x170] sm:$0xff]  ;;  %v71_v17 = vld [vmem:[%s6020_s1 + $0x158] sm:$0xff]  ;;  %v3860_v18 = vcombine.low %v62_v6, %v66_v7 }
  0xa3   :  { %2548 = vmatprep.subr.bf16.mxu0 %v4145_v26  ;;  %2712 = vmatprep.subr.bf16.mxu1 %v4147_v27  ;;  %v412_v26 = vld [vmem:[%s6020_s1 + $0xc00] sm:$0xff]  ;;  %v75_v53 = vld [vmem:[%s6020_s1 + $0x178] sm:$0xff] }
  0xa4   :  { %v416_v27 = vld [vmem:[%s6020_s1 + $0xc20] sm:$0xff] }
  0xa5   :  { %v4208_v37 = vcombine.low %v412_v26, %v416_v27 }
  0xa6   :  { %2549 = vmatpush1.bf16.msra.mxu0 %v4144_v32  ;;  %2713 = vmatpush1.bf16.msra.mxu1 %v4146_v33  ;;  %v4209_v32 = vcombine.high %v412_v26, %v416_v27  ;;  %v4211_v33 = vcombine.high %v413_v15, %v417_v28  ;;  %v82_v26 = vld [vmem:[%s6020_s1 + $0x1b0] sm:$0xff]  ;;  %v79_v27 = vld [vmem:[%s6020_s1 + $0x198] sm:$0xff] }
  0xa7   :  { %2550 = vmatprep.subr.bf16.mxu0 %v4153_v34  ;;  %2714 = vmatprep.subr.bf16.mxu1 %v4155_v35  ;;  %v5178_v34 = vcombine.low %v4986_v25, %v4986_v25  ;;  %v30_v35 = vld [vmem:[%s6020_s1 + $0x10] sm:$0xff]  ;;  %v4210_v25 = vcombine.low %v413_v15, %v417_v28  ;;  %v83_v15 = vld [vmem:[%s6020_s1 + $0x1b8] sm:$0xff] }
  0xaa   :  { %2551 = vmatpush1.bf16.msra.mxu0 %v4152_v40  ;;  %2715 = vmatpush1.bf16.msra.mxu1 %v4154_v41  ;;  %v3829_v40 = vcombine.high %v30_v35, %v34_v36  ;;  %v3831_v41 = vcombine.high %v31_v38, %v35_v39 }
  0xab   :  { %2552 = vmatprep.subr.bf16.mxu0 %v4161_v42  ;;  %2716 = vmatprep.subr.bf16.mxu1 %v4163_v43  ;;  %v4507_v42 = vmov 0   ;;  %v38_v43 = vld [vmem:[%s6020_s1 + $0x50] sm:$0xff] }
  0xae   :  { %2553 = vmatpush1.bf16.msra.mxu0 %v4160_v48  ;;  %2717 = vmatpush1.bf16.msra.mxu1 %v4162_v49  ;;  %v3828_v48 = vcombine.low %v30_v35, %v34_v36  ;;  %v3830_v49 = vcombine.low %v31_v38, %v35_v39  ;;  %v90_v35 = vld [vmem:[%s6020_s1 + $0x1f0] sm:$0xff]  ;;  %v87_v36 = vld [vmem:[%s6020_s1 + $0x1d8] sm:$0xff]  ;;  %v3878_v39 = vcombine.low %v79_v27, %v83_v15 }
  0xaf   :  { %2554 = vmatprep.subr.bf16.mxu0 %v4169_v50  ;;  %2718 = vmatprep.subr.bf16.mxu1 %v4171_v51  ;;  %v3837_v50 = vcombine.high %v38_v43, %v42_v44  ;;  %v3839_v51 = vcombine.high %v39_v46, %v43_v47 }
  0xb2   :  { %2555 = vmatpush1.bf16.msra.mxu0 %v4168_v58  ;;  %2719 = vmatpush1.bf16.msra.mxu1 %v4170_v59  ;;  %v3836_v58 = vcombine.low %v38_v43, %v42_v44  ;;  %v3838_v59 = vcombine.low %v39_v46, %v43_v47  ;;  %v98_v43 = vld [vmem:[%s6020_s1 + $0x230] sm:$0xff]  ;;  %v95_v44 = vld [vmem:[%s6020_s1 + $0x218] sm:$0xff] }
  0xb3   :  { %2556 = vmatprep.subr.bf16.mxu0 %v4177_v60  ;;  %2720 = vmatprep.subr.bf16.mxu1 %v4179_v61  ;;  %v3845_v60 = vcombine.high %v46_v52, %v50_v54  ;;  %v3847_v61 = vcombine.high %v47_v55, %v51_v56 }
  0xb6   :  { %2557 = vmatpush1.bf16.msra.mxu0 %v4176_v2  ;;  %2721 = vmatpush1.bf16.msra.mxu1 %v4178_v3  ;;  %v3844_v2 = vcombine.low %v46_v52, %v50_v54  ;;  %v3846_v3 = vcombine.low %v47_v55, %v51_v56  ;;  %v103_v52 = vld [vmem:[%s6020_s1 + $0x258] sm:$0xff] }
  0xb7   :  { %2558 = vmatprep.subr.bf16.mxu0 %v4185_v4  ;;  %2722 = vmatprep.subr.bf16.mxu1 %v4187_v5  ;;  %v3853_v4 = vcombine.high %v54_v62, %v58_v63  ;;  %v3855_v5 = vcombine.high %v55_v0, %v59_v1  ;;  %v107_v54 = vld [vmem:[%s6020_s1 + $0x278] sm:$0xff] }
  0xb8   :  { %v111_v62 = vld [vmem:[%s6020_s1 + $0x298] sm:$0xff] }
  0xb9   :  { %v115_v63 = vld [vmem:[%s6020_s1 + $0x2b8] sm:$0xff] }
  0xba   :  { %2559 = vmatpush1.bf16.msra.mxu0 %v4184_v10  ;;  %2723 = vmatpush1.bf16.msra.mxu1 %v4186_v11  ;;  %v3854_v10 = vcombine.low %v55_v0, %v59_v1  ;;  %v3861_v11 = vcombine.high %v62_v6, %v66_v7  ;;  %v3902_v1 = vcombine.low %v103_v52, %v107_v54  ;;  %v119_v6 = vld [vmem:[%s6020_s1 + $0x2d8] sm:$0xff] }
  0xbb   :  { %2560 = vmatprep.subr.bf16.mxu0 %v4193_v13  ;;  %2724 = vmatprep.subr.bf16.mxu1 %v4195_v14  ;;  %v70_v14 = vld [vmem:[%s6020_s1 + $0x150] sm:$0xff]  ;;  %v123_v7 = vld [vmem:[%s6020_s1 + $0x2f8] sm:$0xff] }
  0xbc   :  { %v3868_v28 = vcombine.low %v70_v14, %v74_v16 }
  0xbe   :  { %2561 = vmatpush1.bf16.msra.mxu0 %v4192_v19  ;;  %2725 = vmatpush1.bf16.msra.mxu1 %v4194_v20  ;;  %v3869_v20 = vcombine.high %v70_v14, %v74_v16  ;;  %v127_v14 = vld [vmem:[%s6020_s1 + $0x318] sm:$0xff] }
  0xbf   :  { %2562 = vmatprep.subr.bf16.mxu0 %v4201_v23  ;;  %2726 = vmatprep.subr.bf16.mxu1 %v4203_v24  ;;  %v3871_v23 = vcombine.high %v71_v17, %v75_v53  ;;  %v78_v24 = vld [vmem:[%s6020_s1 + $0x190] sm:$0xff]  ;;  %v131_v16 = vld [vmem:[%s6020_s1 + $0x338] sm:$0xff] }
  0xc0   :  { %v3876_v38 = vcombine.low %v78_v24, %v82_v26 }
  0xc2   :  { %2563 = vmatpush1.bf16.msra.mxu0 %v4200_v29  ;;  %2727 = vmatpush1.bf16.msra.mxu1 %v4202_v30  ;;  %v3870_v29 = vcombine.low %v71_v17, %v75_v53  ;;  %v3877_v30 = vcombine.high %v78_v24, %v82_v26  ;;  %v3918_v53 = vcombine.low %v119_v6, %v123_v7  ;;  %v135_v24 = vld [vmem:[%s6020_s1 + $0x358] sm:$0xff] }
  0xc3   :  { %2573 = vmatprep.subr.bf16.mxu0 %v4209_v32  ;;  %2737 = vmatprep.subr.bf16.mxu1 %v4211_v33  ;;  %v3879_v32 = vcombine.high %v79_v27, %v83_v15  ;;  %v86_v33 = vld [vmem:[%s6020_s1 + $0x1d0] sm:$0xff]  ;;  %v139_v26 = vld [vmem:[%s6020_s1 + $0x378] sm:$0xff]  ;;  %v3926_v15 = vcombine.low %v127_v14, %v131_v16 }
  0xc4   :  { %v3884_v46 = vcombine.low %v86_v33, %v90_v35 }
  0xc5   :  { %2565 = vmatmul.mubr.bf16.vlgmr.msra.gmra.mrb[0].mxu0 %v5178_v34  ;;  %2729 = vmatmul.mubr.bf16.vlgmr.msra.gmra.mrb[0].mxu1 %v5178_v34 }
  0xc6   :  { %2574 = vmatpush1.bf16.msra.mxu0 %v4208_v37  ;;  %2738 = vmatpush1.bf16.msra.mxu1 %v4210_v25  ;;  %v91_v37 = vld [vmem:[%s6020_s1 + $0x1f8] sm:$0xff]  ;;  %v3885_v25 = vcombine.high %v86_v33, %v90_v35 }
  0xc7   :  { %2605 = vmatprep.mubr.bf16.mxu0 %v4507_v42  ;;  %2769 = vmatprep.mubr.bf16.mxu1 %v4507_v42  ;;  %v3886_v47 = vcombine.low %v87_v36, %v91_v37  ;;  %v143_v33 = vld [vmem:[%s6020_s1 + $0x398] sm:$0xff] }
  0xc8   :  { %2778 = vmatprep.subr.bf16.mxu0 %v3829_v40  ;;  %2942 = vmatprep.subr.bf16.mxu1 %v3831_v41  ;;  %v3887_v40 = vcombine.high %v87_v36, %v91_v37  ;;  %v94_v41 = vld [vmem:[%s6020_s1 + $0x210] sm:$0xff]  ;;  %v147_v35 = vld [vmem:[%s6020_s1 + $0x3b8] sm:$0xff]  ;;  %v3934_v37 = vcombine.low %v135_v24, %v139_v26 }
  0xc9   :  { %v3892_v55 = vcombine.low %v94_v41, %v98_v43 }
  0xd1   :  { %4216 = vmatmul.mubr.msk.bf16.vlgmr.msra.gmra.mrb[0].mxu0 %vm2446_vm0, %v4437_v45  ;;  %4217 = vmatmul.mubr.msk.bf16.vlgmr.msra.gmra.mrb[0].mxu1 %vm2446_vm0, %v4437_v45  ;;  %v99_v45 = vld [vmem:[%s6020_s1 + $0x238] sm:$0xff] }
  0xd2   :  { %2779 = vmatpush1.bf16.msra.mxu0 %v3828_v48  ;;  %2943 = vmatpush1.bf16.msra.mxu1 %v3830_v49  ;;  %v3893_v48 = vcombine.high %v94_v41, %v98_v43  ;;  %v3895_v49 = vcombine.high %v95_v44, %v99_v45  ;;  %v3894_v56 = vcombine.low %v95_v44, %v99_v45  ;;  %v151_v41 = vld [vmem:[%s6020_s1 + $0x3d8] sm:$0xff] }
  0xd3   :  { %2780 = vmatprep.subr.bf16.mxu0 %v3837_v50  ;;  %2944 = vmatprep.subr.bf16.mxu1 %v3839_v51  ;;  %v102_v50 = vld [vmem:[%s6020_s1 + $0x250] sm:$0xff]  ;;  %v155_v43 = vld [vmem:[%s6020_s1 + $0x3f8] sm:$0xff]  ;;  %v3942_v45 = vcombine.low %v143_v33, %v147_v35 }
  0xd4   :  { %2810 = vmatprep.mubr.bf16.mxu0 %v4640_v57  ;;  %2974 = vmatprep.mubr.bf16.mxu1 %v4640_v57  ;;  %v63_v57 = vld [vmem:[%s6020_s1 + $0x118] sm:$0xff]  ;;  %v106_v51 = vld [vmem:[%s6020_s1 + $0x270] sm:$0xff] }
  0xd5   :  { %v3863_v13 = vcombine.high %v63_v57, %v67_v8  ;;  %v3862_v19 = vcombine.low %v63_v57, %v67_v8  ;;  %v3900_v0 = vcombine.low %v102_v50, %v106_v51  ;;  %v3910_v8 = vcombine.low %v111_v62, %v115_v63 }
  0xd6   :  { %2781 = vmatpush1.bf16.msra.mxu0 %v3836_v58  ;;  %2945 = vmatpush1.bf16.msra.mxu1 %v3838_v59  ;;  %v3901_v58 = vcombine.high %v102_v50, %v106_v51  ;;  %v3903_v59 = vcombine.high %v103_v52, %v107_v54  ;;  %v159_v50 = vld [vmem:[%s6020_s1 + $0x418] sm:$0xff]  ;;  %v3950_v54 = vcombine.low %v151_v41, %v155_v43 }
  0xd7   :  { %2782 = vmatprep.subr.bf16.mxu0 %v3845_v60  ;;  %2946 = vmatprep.subr.bf16.mxu1 %v3847_v61  ;;  %v110_v60 = vld [vmem:[%s6020_s1 + $0x290] sm:$0xff]  ;;  %v163_v51 = vld [vmem:[%s6020_s1 + $0x438] sm:$0xff] }
  0xd8   :  { %v114_v61 = vld [vmem:[%s6020_s1 + $0x2b0] sm:$0xff] }
  0xd9   :  { %v3908_v57 = vcombine.low %v110_v60, %v114_v61 }
  0xda   :  { %2783 = vmatpush1.bf16.msra.mxu0 %v3844_v2  ;;  %2947 = vmatpush1.bf16.msra.mxu1 %v3846_v3  ;;  %v3909_v2 = vcombine.high %v110_v60, %v114_v61  ;;  %v3911_v3 = vcombine.high %v111_v62, %v115_v63  ;;  %v167_v60 = vld [vmem:[%s6020_s1 + $0x458] sm:$0xff]  ;;  %v3958_v63 = vcombine.low %v159_v50, %v163_v51 }
  0xdb   :  { %2784 = vmatprep.subr.bf16.mxu0 %v3853_v4  ;;  %2948 = vmatprep.subr.bf16.mxu1 %v3855_v5  ;;  %v118_v4 = vld [vmem:[%s6020_s1 + $0x2d0] sm:$0xff]  ;;  %v171_v61 = vld [vmem:[%s6020_s1 + $0x478] sm:$0xff] }
  0xdc   :  { %v122_v5 = vld [vmem:[%s6020_s1 + $0x2f0] sm:$0xff] }
  0xdd   :  { %v3916_v17 = vcombine.low %v118_v4, %v122_v5 }
  0xde   :  { %2785 = vmatpush1.bf16.msra.mxu0 %v3852_v9  ;;  %2949 = vmatpush1.bf16.msra.mxu1 %v3854_v10  ;;  %v3917_v9 = vcombine.high %v118_v4, %v122_v5  ;;  %v3919_v10 = vcombine.high %v119_v6, %v123_v7  ;;  %v175_v4 = vld [vmem:[%s6020_s1 + $0x498] sm:$0xff]  ;;  %v3966_v7 = vcombine.low %v167_v60, %v171_v61 }
  0xdf   :  { %2786 = vmatprep.subr.bf16.mxu0 %v3861_v11  ;;  %2950 = vmatprep.subr.bf16.mxu1 %v3863_v13  ;;  %v126_v11 = vld [vmem:[%s6020_s1 + $0x310] sm:$0xff]  ;;  %v179_v5 = vld [vmem:[%s6020_s1 + $0x4b8] sm:$0xff] }
  0xe0   :  { %v130_v13 = vld [vmem:[%s6020_s1 + $0x330] sm:$0xff] }
  0xe1   :  { %v3924_v27 = vcombine.low %v126_v11, %v130_v13 }
  0xe2   :  { %2787 = vmatpush1.bf16.msra.mxu0 %v3860_v18  ;;  %2951 = vmatpush1.bf16.msra.mxu1 %v3862_v19  ;;  %v3925_v18 = vcombine.high %v126_v11, %v130_v13  ;;  %v3927_v19 = vcombine.high %v127_v14, %v131_v16  ;;  %v183_v11 = vld [vmem:[%s6020_s1 + $0x4d8] sm:$0xff]  ;;  %v190_v14 = vld [vmem:[%s6020_s1 + $0x510] sm:$0xff] }
  0xe3   :  { %2788 = vmatprep.subr.bf16.mxu0 %v3869_v20  ;;  %2952 = vmatprep.subr.bf16.mxu1 %v3871_v23  ;;  %v134_v20 = vld [vmem:[%s6020_s1 + $0x350] sm:$0xff] }
  0xe4   :  { %v138_v23 = vld [vmem:[%s6020_s1 + $0x370] sm:$0xff] }
  0xe5   :  { %v3932_v36 = vcombine.low %v134_v20, %v138_v23  ;;  %v194_v16 = vld [vmem:[%s6020_s1 + $0x530] sm:$0xff] }
  0xe6   :  { %2789 = vmatpush1.bf16.msra.mxu0 %v3868_v28  ;;  %2953 = vmatpush1.bf16.msra.mxu1 %v3870_v29  ;;  %v3933_v28 = vcombine.high %v134_v20, %v138_v23  ;;  %v3935_v29 = vcombine.high %v135_v24, %v139_v26  ;;  %v198_v23 = vld [vmem:[%s6020_s1 + $0x550] sm:$0xff] }
  0xe7   :  { %2790 = vmatprep.subr.bf16.mxu0 %v3877_v30  ;;  %2954 = vmatprep.subr.bf16.mxu1 %v3879_v32  ;;  %v142_v30 = vld [vmem:[%s6020_s1 + $0x390] sm:$0xff] }
  0xe8   :  { %v146_v32 = vld [vmem:[%s6020_s1 + $0x3b0] sm:$0xff] }
  0xe9   :  { %v3940_v44 = vcombine.low %v142_v30, %v146_v32  ;;  %v202_v24 = vld [vmem:[%s6020_s1 + $0x570] sm:$0xff] }
  0xea   :  { %2791 = vmatpush1.bf16.msra.mxu0 %v3876_v38  ;;  %2955 = vmatpush1.bf16.msra.mxu1 %v3878_v39  ;;  %v3941_v38 = vcombine.high %v142_v30, %v146_v32  ;;  %v3943_v39 = vcombine.high %v143_v33, %v147_v35  ;;  %v3988_v30 = vcombine.low %v190_v14, %v194_v16  ;;  %v206_v35 = vld [vmem:[%s6020_s1 + $0x590] sm:$0xff] }
  0xeb   :  { %2792 = vmatprep.subr.bf16.mxu0 %v3885_v25  ;;  %2956 = vmatprep.subr.bf16.mxu1 %v3887_v40  ;;  %v150_v25 = vld [vmem:[%s6020_s1 + $0x3d0] sm:$0xff]  ;;  %v3997_v33 = vcombine.high %v198_v23, %v202_v24 }
  0xec   :  { %v154_v40 = vld [vmem:[%s6020_s1 + $0x3f0] sm:$0xff] }
  0xed   :  { %v3948_v52 = vcombine.low %v150_v25, %v154_v40 }
  0xee   :  { %2793 = vmatpush1.bf16.msra.mxu0 %v3884_v46  ;;  %2957 = vmatpush1.bf16.msra.mxu1 %v3886_v47  ;;  %v3949_v46 = vcombine.high %v150_v25, %v154_v40  ;;  %v3951_v47 = vcombine.high %v151_v41, %v155_v43  ;;  %v3996_v25 = vcombine.low %v198_v23, %v202_v24  ;;  %v214_v43 = vld [vmem:[%s6020_s1 + $0x5d0] sm:$0xff]  ;;  %v255_v24 = vld [vmem:[%s6020_s1 + $0x718] sm:$0xff] }
  0xef   :  { %2794 = vmatprep.subr.bf16.mxu0 %v3893_v48  ;;  %2958 = vmatprep.subr.bf16.mxu1 %v3895_v49  ;;  %v158_v48 = vld [vmem:[%s6020_s1 + $0x410] sm:$0xff] }
  0xf0   :  { %v162_v49 = vld [vmem:[%s6020_s1 + $0x430] sm:$0xff] }
  0xf1   :  { %v3956_v62 = vcombine.low %v158_v48, %v162_v49 }
  0xf2   :  { %2795 = vmatpush1.bf16.msra.mxu0 %v3892_v55  ;;  %2959 = vmatpush1.bf16.msra.mxu1 %v3894_v56  ;;  %v3957_v55 = vcombine.high %v158_v48, %v162_v49  ;;  %v3959_v56 = vcombine.high %v159_v50, %v163_v51 }
  0xf3   :  { %2796 = vmatprep.subr.bf16.mxu0 %v3901_v58  ;;  %2960 = vmatprep.subr.bf16.mxu1 %v3903_v59  ;;  %v166_v58 = vld [vmem:[%s6020_s1 + $0x450] sm:$0xff] }
  0xf4   :  { %v170_v59 = vld [vmem:[%s6020_s1 + $0x470] sm:$0xff] }
  0xf5   :  { %v3964_v6 = vcombine.low %v166_v58, %v170_v59 }
  0xf6   :  { %2797 = vmatpush1.bf16.msra.mxu0 %v3900_v0  ;;  %2961 = vmatpush1.bf16.msra.mxu1 %v3902_v1  ;;  %v3965_v0 = vcombine.high %v166_v58, %v170_v59  ;;  %v3967_v1 = vcombine.high %v167_v60, %v171_v61  ;;  %v230_v61 = vld [vmem:[%s6020_s1 + $0x650] sm:$0xff] }
  0xf7   :  { %2798 = vmatprep.subr.bf16.mxu0 %v3909_v2  ;;  %2962 = vmatprep.subr.bf16.mxu1 %v3911_v3  ;;  %v174_v2 = vld [vmem:[%s6020_s1 + $0x490] sm:$0xff] }
  0xf8   :  { %v178_v3 = vld [vmem:[%s6020_s1 + $0x4b0] sm:$0xff] }
  0xf9   :  { %v3972_v13 = vcombine.low %v174_v2, %v178_v3 }
  0xfa   :  { %2799 = vmatpush1.bf16.msra.mxu0 %v3908_v57  ;;  %2963 = vmatpush1.bf16.msra.mxu1 %v3910_v8  ;;  %v3973_v57 = vcombine.high %v174_v2, %v178_v3  ;;  %v3975_v8 = vcombine.high %v175_v4, %v179_v5 }
  0xfb   :  { %2800 = vmatprep.subr.bf16.mxu0 %v3917_v9  ;;  %2964 = vmatprep.subr.bf16.mxu1 %v3919_v10  ;;  %v182_v9 = vld [vmem:[%s6020_s1 + $0x4d0] sm:$0xff] }
  0xfc   :  { %v186_v10 = vld [vmem:[%s6020_s1 + $0x4f0] sm:$0xff] }
  0xfd   :  { %v3980_v20 = vcombine.low %v182_v9, %v186_v10 }
  0xfe   :  { %2801 = vmatpush1.bf16.msra.mxu0 %v3916_v17  ;;  %2965 = vmatpush1.bf16.msra.mxu1 %v3918_v53  ;;  %v3974_v17 = vcombine.low %v175_v4, %v179_v5  ;;  %v3981_v53 = vcombine.high %v182_v9, %v186_v10  ;;  %v238_v5 = vld [vmem:[%s6020_s1 + $0x690] sm:$0xff] }
  0xff   :  { %2802 = vmatprep.subr.bf16.mxu0 %v3925_v18  ;;  %2966 = vmatprep.subr.bf16.mxu1 %v3927_v19  ;;  %v191_v18 = vld [vmem:[%s6020_s1 + $0x518] sm:$0xff] }
 0x102   :  { %2803 = vmatpush1.bf16.msra.mxu0 %v3924_v27  ;;  %2967 = vmatpush1.bf16.msra.mxu1 %v3926_v15  ;;  %v3989_v27 = vcombine.high %v190_v14, %v194_v16  ;;  %v247_v16 = vld [vmem:[%s6020_s1 + $0x6d8] sm:$0xff] }
 0x103   :  { %2804 = vmatprep.subr.bf16.mxu0 %v3933_v28  ;;  %2968 = vmatprep.subr.bf16.mxu1 %v3935_v29  ;;  %v199_v28 = vld [vmem:[%s6020_s1 + $0x558] sm:$0xff] }
 0x104   :  { %v203_v29 = vld [vmem:[%s6020_s1 + $0x578] sm:$0xff] }
 0x105   :  { %v3998_v40 = vcombine.low %v199_v28, %v203_v29 }
 0x106   :  { %2805 = vmatpush1.bf16.msra.mxu0 %v3932_v36  ;;  %2969 = vmatpush1.bf16.msra.mxu1 %v3934_v37  ;;  %v210_v36 = vld [vmem:[%s6020_s1 + $0x5b0] sm:$0xff]  ;;  %v3999_v37 = vcombine.high %v199_v28, %v203_v29 }
 0x107   :  { %2806 = vmatprep.subr.bf16.mxu0 %v3941_v38  ;;  %2970 = vmatprep.subr.bf16.mxu1 %v3943_v39  ;;  %v207_v38 = vld [vmem:[%s6020_s1 + $0x598] sm:$0xff]  ;;  %v4005_v41 = vcombine.high %v206_v35, %v210_v36  ;;  %v4004_v48 = vcombine.low %v206_v35, %v210_v36  ;;  %v266_v28 = vld [vmem:[%s6020_s1 + $0x770] sm:$0xff] }
 0x108   :  { %v211_v39 = vld [vmem:[%s6020_s1 + $0x5b8] sm:$0xff] }
 0x109   :  { %v4006_v49 = vcombine.low %v207_v38, %v211_v39 }
 0x10a   :  { %2807 = vmatpush1.bf16.msra.mxu0 %v3940_v44  ;;  %2971 = vmatpush1.bf16.msra.mxu1 %v3942_v45  ;;  %v4007_v44 = vcombine.high %v207_v38, %v211_v39  ;;  %v218_v45 = vld [vmem:[%s6020_s1 + $0x5f0] sm:$0xff] }
 0x10b   :  { %2808 = vmatprep.subr.bf16.mxu0 %v3949_v46  ;;  %2972 = vmatprep.subr.bf16.mxu1 %v3951_v47  ;;  %v215_v46 = vld [vmem:[%s6020_s1 + $0x5d8] sm:$0xff]  ;;  %v4013_v50 = vcombine.high %v214_v43, %v218_v45  ;;  %v4012_v58 = vcombine.low %v214_v43, %v218_v45  ;;  %v270_v39 = vld [vmem:[%s6020_s1 + $0x790] sm:$0xff] }
 0x10c   :  { %v219_v47 = vld [vmem:[%s6020_s1 + $0x5f8] sm:$0xff]  ;;  %v278_v45 = vld [vmem:[%s6020_s1 + $0x7d0] sm:$0xff] }
 0x10d   :  { %v4015_v51 = vcombine.high %v215_v46, %v219_v47  ;;  %v4014_v59 = vcombine.low %v215_v46, %v219_v47  ;;  %v275_v43 = vld [vmem:[%s6020_s1 + $0x7b8] sm:$0xff] }
 0x10e   :  { %2809 = vmatpush1.bf16.msra.mxu0 %v3948_v52  ;;  %2973 = vmatpush1.bf16.msra.mxu1 %v3950_v54  ;;  %v222_v52 = vld [vmem:[%s6020_s1 + $0x610] sm:$0xff] }
 0x10f   :  { %2819 = vmatprep.subr.bf16.mxu0 %v3957_v55  ;;  %2983 = vmatprep.subr.bf16.mxu1 %v3959_v56  ;;  %v226_v54 = vld [vmem:[%s6020_s1 + $0x630] sm:$0xff]  ;;  %v223_v55 = vld [vmem:[%s6020_s1 + $0x618] sm:$0xff] }
 0x110   :  { %v227_v56 = vld [vmem:[%s6020_s1 + $0x638] sm:$0xff]  ;;  %v4021_v60 = vcombine.high %v222_v52, %v226_v54  ;;  %v4020_v2 = vcombine.low %v222_v52, %v226_v54  ;;  %v286_v54 = vld [vmem:[%s6020_s1 + $0x810] sm:$0xff] }
 0x111   :  { %2811 = vmatmul.mubr.bf16.vlgmr.msra.gmra.mrb[4].mxu0 %v4766_v12  ;;  %2975 = vmatmul.mubr.bf16.vlgmr.msra.gmra.mrb[4].mxu1 %v4766_v12  ;;  %v187_v12 = vld [vmem:[%s6020_s1 + $0x4f8] sm:$0xff]  ;;  %v4022_v3 = vcombine.low %v223_v55, %v227_v56 }
 0x112   :  { %2820 = vmatpush1.bf16.msra.mxu0 %v3956_v62  ;;  %2984 = vmatpush1.bf16.msra.mxu1 %v3958_v63  ;;  %v3983_v19 = vcombine.high %v183_v11, %v187_v12  ;;  %v3982_v26 = vcombine.low %v183_v11, %v187_v12  ;;  %v4023_v62 = vcombine.high %v223_v55, %v227_v56  ;;  %v234_v63 = vld [vmem:[%s6020_s1 + $0x670] sm:$0xff] }
 0x113   :  { %2821 = vmatprep.subr.bf16.mxu0 %v3965_v0  ;;  %2985 = vmatprep.subr.bf16.mxu1 %v3967_v1  ;;  %v231_v0 = vld [vmem:[%s6020_s1 + $0x658] sm:$0xff]  ;;  %v4029_v4 = vcombine.high %v230_v61, %v234_v63  ;;  %v4028_v9 = vcombine.low %v230_v61, %v234_v63  ;;  %v246_v12 = vld [vmem:[%s6020_s1 + $0x6d0] sm:$0xff] }
 0x114   :  { %2851 = vmatprep.mubr.bf16.mxu0 %v4787_v21  ;;  %3015 = vmatprep.mubr.bf16.mxu1 %v4787_v21  ;;  %v195_v21 = vld [vmem:[%s6020_s1 + $0x538] sm:$0xff]  ;;  %v294_v63 = vld [vmem:[%s6020_s1 + $0x850] sm:$0xff] }
 0x115   :  { %v3991_v15 = vcombine.high %v191_v18, %v195_v21  ;;  %v3990_v32 = vcombine.low %v191_v18, %v195_v21  ;;  %v235_v1 = vld [vmem:[%s6020_s1 + $0x678] sm:$0xff] }
 0x116   :  { %2822 = vmatpush1.bf16.msra.mxu0 %v3964_v6  ;;  %2986 = vmatpush1.bf16.msra.mxu1 %v3966_v7  ;;  %v242_v6 = vld [vmem:[%s6020_s1 + $0x6b0] sm:$0xff]  ;;  %v4031_v7 = vcombine.high %v231_v0, %v235_v1  ;;  %v4030_v10 = vcombine.low %v231_v0, %v235_v1  ;;  %v291_v61 = vld [vmem:[%s6020_s1 + $0x838] sm:$0xff] }
 0x117   :  { %2823 = vmatprep.subr.bf16.mxu0 %v3973_v57  ;;  %2987 = vmatprep.subr.bf16.mxu1 %v3975_v8  ;;  %v239_v57 = vld [vmem:[%s6020_s1 + $0x698] sm:$0xff]  ;;  %v4037_v11 = vcombine.high %v238_v5, %v242_v6 }
 0x118   :  { %v243_v8 = vld [vmem:[%s6020_s1 + $0x6b8] sm:$0xff] }
 0x119   :  { %v4039_v14 = vcombine.high %v239_v57, %v243_v8  ;;  %v4038_v18 = vcombine.low %v239_v57, %v243_v8 }
 0x11a   :  { %2824 = vmatpush1.bf16.msra.mxu0 %v3972_v13  ;;  %2988 = vmatpush1.bf16.msra.mxu1 %v3974_v17  ;;  %v250_v13 = vld [vmem:[%s6020_s1 + $0x6f0] sm:$0xff]  ;;  %v251_v17 = vld [vmem:[%s6020_s1 + $0x6f8] sm:$0xff] }
 0x11b   :  { %2825 = vmatprep.subr.bf16.mxu0 %v3981_v53  ;;  %2989 = vmatprep.subr.bf16.mxu1 %v3983_v19  ;;  %v4036_v53 = vcombine.low %v238_v5, %v242_v6  ;;  %v4045_v21 = vcombine.high %v246_v12, %v250_v13  ;;  %v254_v19 = vld [vmem:[%s6020_s1 + $0x710] sm:$0xff]  ;;  %v4047_v23 = vcombine.high %v247_v16, %v251_v17  ;;  %v299_v5 = vld [vmem:[%s6020_s1 + $0x878] sm:$0xff] }
 0x11c   :  { %v4046_v29 = vcombine.low %v247_v16, %v251_v17 }
 0x11e   :  { %2826 = vmatpush1.bf16.msra.mxu0 %v3980_v20  ;;  %2990 = vmatpush1.bf16.msra.mxu1 %v3982_v26  ;;  %v258_v20 = vld [vmem:[%s6020_s1 + $0x730] sm:$0xff]  ;;  %v259_v26 = vld [vmem:[%s6020_s1 + $0x738] sm:$0xff] }
 0x11f   :  { %2827 = vmatprep.subr.bf16.mxu0 %v3989_v27  ;;  %2991 = vmatprep.subr.bf16.mxu1 %v3991_v15  ;;  %v4044_v27 = vcombine.low %v246_v12, %v250_v13  ;;  %v262_v15 = vld [vmem:[%s6020_s1 + $0x750] sm:$0xff]  ;;  %v4055_v35 = vcombine.high %v255_v24, %v259_v26  ;;  %v4052_v36 = vcombine.low %v254_v19, %v258_v20  ;;  %v307_v12 = vld [vmem:[%s6020_s1 + $0x8b8] sm:$0xff] }
 0x120   :  { %v4061_v38 = vcombine.high %v262_v15, %v266_v28 }
 0x122   :  { %2828 = vmatpush1.bf16.msra.mxu0 %v3988_v30  ;;  %2992 = vmatpush1.bf16.msra.mxu1 %v3990_v32  ;;  %v4053_v30 = vcombine.high %v254_v19, %v258_v20  ;;  %v263_v32 = vld [vmem:[%s6020_s1 + $0x758] sm:$0xff] }
 0x123   :  { %2829 = vmatprep.subr.bf16.mxu0 %v3997_v33  ;;  %2993 = vmatprep.subr.bf16.mxu1 %v3999_v37  ;;  %v267_v33 = vld [vmem:[%s6020_s1 + $0x778] sm:$0xff]  ;;  %v4054_v37 = vcombine.low %v255_v24, %v259_v26  ;;  %v318_v26 = vld [vmem:[%s6020_s1 + $0x910] sm:$0xff] }
 0x124   :  { %v4062_v46 = vcombine.low %v263_v32, %v267_v33 }
 0x126   :  { %2830 = vmatpush1.bf16.msra.mxu0 %v3996_v25  ;;  %2994 = vmatpush1.bf16.msra.mxu1 %v3998_v40  ;;  %v274_v25 = vld [vmem:[%s6020_s1 + $0x7b0] sm:$0xff]  ;;  %v271_v40 = vld [vmem:[%s6020_s1 + $0x798] sm:$0xff] }
 0x127   :  { %2831 = vmatprep.subr.bf16.mxu0 %v4005_v41  ;;  %2995 = vmatprep.subr.bf16.mxu1 %v4007_v44  ;;  %v4063_v41 = vcombine.high %v263_v32, %v267_v33  ;;  %v4060_v44 = vcombine.low %v262_v15, %v266_v28  ;;  %v4069_v47 = vcombine.high %v270_v39, %v274_v25  ;;  %v323_v15 = vld [vmem:[%s6020_s1 + $0x938] sm:$0xff]  ;;  %v326_v33 = vld [vmem:[%s6020_s1 + $0x950] sm:$0xff] }
 0x128   :  { %v4068_v52 = vcombine.low %v270_v39, %v274_v25  ;;  %v4070_v55 = vcombine.low %v271_v40, %v275_v43 }
 0x12a   :  { %2832 = vmatpush1.bf16.msra.mxu0 %v4004_v48  ;;  %2996 = vmatpush1.bf16.msra.mxu1 %v4006_v49  ;;  %v282_v48 = vld [vmem:[%s6020_s1 + $0x7f0] sm:$0xff]  ;;  %v279_v49 = vld [vmem:[%s6020_s1 + $0x7d8] sm:$0xff] }
 0x12b   :  { %2833 = vmatprep.subr.bf16.mxu0 %v4013_v50  ;;  %2997 = vmatprep.subr.bf16.mxu1 %v4015_v51  ;;  %v4071_v50 = vcombine.high %v271_v40, %v275_v43  ;;  %v283_v51 = vld [vmem:[%s6020_s1 + $0x7f8] sm:$0xff]  ;;  %v4077_v56 = vcombine.high %v278_v45, %v282_v48  ;;  %v338_v43 = vld [vmem:[%s6020_s1 + $0x9b0] sm:$0xff] }
 0x12c   :  { %v4078_v0 = vcombine.low %v279_v49, %v283_v51 }
 0x12e   :  { %2834 = vmatpush1.bf16.msra.mxu0 %v4012_v58  ;;  %2998 = vmatpush1.bf16.msra.mxu1 %v4014_v59  ;;  %v290_v58 = vld [vmem:[%s6020_s1 + $0x830] sm:$0xff]  ;;  %v287_v59 = vld [vmem:[%s6020_s1 + $0x818] sm:$0xff] }
 0x12f   :  { %2835 = vmatprep.subr.bf16.mxu0 %v4021_v60  ;;  %2999 = vmatprep.subr.bf16.mxu1 %v4023_v62  ;;  %v4079_v60 = vcombine.high %v279_v49, %v283_v51  ;;  %v4076_v62 = vcombine.low %v278_v45, %v282_v48  ;;  %v4085_v1 = vcombine.high %v286_v54, %v290_v58  ;;  %v339_v45 = vld [vmem:[%s6020_s1 + $0x9b8] sm:$0xff]  ;;  %v346_v51 = vld [vmem:[%s6020_s1 + $0x9f0] sm:$0xff] }
 0x130   :  { %v4084_v6 = vcombine.low %v286_v54, %v290_v58  ;;  %v4086_v57 = vcombine.low %v287_v59, %v291_v61  ;;  %v347_v54 = vld [vmem:[%s6020_s1 + $0x9f8] sm:$0xff] }
 0x132   :  { %2836 = vmatpush1.bf16.msra.mxu0 %v4020_v2  ;;  %3000 = vmatpush1.bf16.msra.mxu1 %v4022_v3  ;;  %v298_v2 = vld [vmem:[%s6020_s1 + $0x870] sm:$0xff]  ;;  %v295_v3 = vld [vmem:[%s6020_s1 + $0x858] sm:$0xff] }
 0x133   :  { %2837 = vmatprep.subr.bf16.mxu0 %v4029_v4  ;;  %3001 = vmatprep.subr.bf16.mxu1 %v4031_v7  ;;  %v4087_v4 = vcombine.high %v287_v59, %v291_v61  ;;  %v302_v7 = vld [vmem:[%s6020_s1 + $0x890] sm:$0xff]  ;;  %v4093_v8 = vcombine.high %v294_v63, %v298_v2  ;;  %v4092_v13 = vcombine.low %v294_v63, %v298_v2  ;;  %v355_v63 = vld [vmem:[%s6020_s1 + $0xa38] sm:$0xff] }
 0x134   :  { %v354_v61 = vld [vmem:[%s6020_s1 + $0xa30] sm:$0xff] }
 0x136   :  { %2838 = vmatpush1.bf16.msra.mxu0 %v4028_v9  ;;  %3002 = vmatpush1.bf16.msra.mxu1 %v4030_v10  ;;  %v306_v9 = vld [vmem:[%s6020_s1 + $0x8b0] sm:$0xff]  ;;  %v303_v10 = vld [vmem:[%s6020_s1 + $0x898] sm:$0xff] }
 0x137   :  { %2839 = vmatprep.subr.bf16.mxu0 %v4037_v11  ;;  %3003 = vmatprep.subr.bf16.mxu1 %v4039_v14  ;;  %v4095_v11 = vcombine.high %v295_v3, %v299_v5  ;;  %v4094_v14 = vcombine.low %v295_v3, %v299_v5  ;;  %v4101_v16 = vcombine.high %v302_v7, %v306_v9  ;;  %v362_v5 = vld [vmem:[%s6020_s1 + $0xa70] sm:$0xff] }
 0x138   :  { %v4103_v17 = vcombine.high %v303_v10, %v307_v12  ;;  %v4100_v19 = vcombine.low %v302_v7, %v306_v9  ;;  %v4102_v20 = vcombine.low %v303_v10, %v307_v12  ;;  %v363_v7 = vld [vmem:[%s6020_s1 + $0xa78] sm:$0xff]  ;;  %v370_v12 = vld [vmem:[%s6020_s1 + $0xab0] sm:$0xff] }
 0x13a   :  { %2840 = vmatpush1.bf16.msra.mxu0 %v4036_v53  ;;  %3004 = vmatpush1.bf16.msra.mxu1 %v4038_v18  ;;  %v310_v53 = vld [vmem:[%s6020_s1 + $0x8d0] sm:$0xff] }
 0x13b   :  { %2841 = vmatprep.subr.bf16.mxu0 %v4045_v21  ;;  %3005 = vmatprep.subr.bf16.mxu1 %v4047_v23  ;;  %v314_v18 = vld [vmem:[%s6020_s1 + $0x8f0] sm:$0xff]  ;;  %v315_v21 = vld [vmem:[%s6020_s1 + $0x8f8] sm:$0xff] }
 0x13c   :  { %v4109_v23 = vcombine.high %v310_v53, %v314_v18  ;;  %v4108_v28 = vcombine.low %v310_v53, %v314_v18 }
 0x13e   :  { %2842 = vmatpush1.bf16.msra.mxu0 %v4044_v27  ;;  %3006 = vmatpush1.bf16.msra.mxu1 %v4046_v29  ;;  %v322_v27 = vld [vmem:[%s6020_s1 + $0x930] sm:$0xff] }
 0x13f   :  { %2843 = vmatprep.subr.bf16.mxu0 %v4053_v30  ;;  %3007 = vmatprep.subr.bf16.mxu1 %v4055_v35  ;;  %v4117_v30 = vcombine.high %v318_v26, %v322_v27  ;;  %v330_v35 = vld [vmem:[%s6020_s1 + $0x970] sm:$0xff] }
 0x140   :  { %v4125_v25 = vcombine.high %v326_v33, %v330_v35 }
 0x142   :  { %2844 = vmatpush1.bf16.msra.mxu0 %v4052_v36  ;;  %3008 = vmatpush1.bf16.msra.mxu1 %v4054_v37  ;;  %v327_v36 = vld [vmem:[%s6020_s1 + $0x958] sm:$0xff] }
 0x143   :  { %2845 = vmatprep.subr.bf16.mxu0 %v4061_v38  ;;  %3009 = vmatprep.subr.bf16.mxu1 %v4063_v41  ;;  %v331_v37 = vld [vmem:[%s6020_s1 + $0x978] sm:$0xff]  ;;  %v4116_v38 = vcombine.low %v318_v26, %v322_v27  ;;  %v334_v41 = vld [vmem:[%s6020_s1 + $0x990] sm:$0xff] }
 0x144   :  { %v4127_v40 = vcombine.high %v327_v36, %v331_v37  ;;  %v4133_v48 = vcombine.high %v334_v41, %v338_v43 }
 0x146   :  { %2846 = vmatpush1.bf16.msra.mxu0 %v4060_v44  ;;  %3010 = vmatpush1.bf16.msra.mxu1 %v4062_v46  ;;  %v335_v44 = vld [vmem:[%s6020_s1 + $0x998] sm:$0xff]  ;;  %v4124_v46 = vcombine.low %v326_v33, %v330_v35 }
 0x147   :  { %2847 = vmatprep.subr.bf16.mxu0 %v4069_v47  ;;  %3011 = vmatprep.subr.bf16.mxu1 %v4071_v50  ;;  %v4126_v47 = vcombine.low %v327_v36, %v331_v37  ;;  %v4135_v49 = vcombine.high %v335_v44, %v339_v45  ;;  %v342_v50 = vld [vmem:[%s6020_s1 + $0x9d0] sm:$0xff] }
 0x148   :  { %v4141_v58 = vcombine.high %v342_v50, %v346_v51  ;;  %v390_v36 = vld [vmem:[%s6020_s1 + $0xb50] sm:$0xff] }
 0x149   :  { %v394_v37 = vld [vmem:[%s6020_s1 + $0xb70] sm:$0xff] }
 0x14a   :  { %2848 = vmatpush1.bf16.msra.mxu0 %v4068_v52  ;;  %3012 = vmatpush1.bf16.msra.mxu1 %v4070_v55  ;;  %v343_v52 = vld [vmem:[%s6020_s1 + $0x9d8] sm:$0xff]  ;;  %v4132_v55 = vcombine.low %v334_v41, %v338_v43  ;;  %v4189_v41 = vcombine.high %v390_v36, %v394_v37 }
 0x14b   :  { %2849 = vmatprep.subr.bf16.mxu0 %v4077_v56  ;;  %3013 = vmatprep.subr.bf16.mxu1 %v4079_v60  ;;  %v4134_v56 = vcombine.low %v335_v44, %v339_v45  ;;  %v4143_v59 = vcombine.high %v343_v52, %v347_v54  ;;  %v350_v60 = vld [vmem:[%s6020_s1 + $0xa10] sm:$0xff] }
 0x14c   :  { %v4149_v2 = vcombine.high %v350_v60, %v354_v61  ;;  %v398_v44 = vld [vmem:[%s6020_s1 + $0xb90] sm:$0xff] }
 0x14d   :  { %v402_v45 = vld [vmem:[%s6020_s1 + $0xbb0] sm:$0xff] }
 0x14e   :  { %2850 = vmatpush1.bf16.msra.mxu0 %v4076_v62  ;;  %3014 = vmatpush1.bf16.msra.mxu1 %v4078_v0  ;;  %v351_v62 = vld [vmem:[%s6020_s1 + $0xa18] sm:$0xff]  ;;  %v4140_v0 = vcombine.low %v342_v50, %v346_v51  ;;  %v4197_v50 = vcombine.high %v398_v44, %v402_v45 }
 0x14f   :  { %2860 = vmatprep.subr.bf16.mxu0 %v4085_v1  ;;  %3024 = vmatprep.subr.bf16.mxu1 %v4087_v4  ;;  %v4142_v1 = vcombine.low %v343_v52, %v347_v54  ;;  %v4151_v3 = vcombine.high %v351_v62, %v355_v63  ;;  %v358_v4 = vld [vmem:[%s6020_s1 + $0xa50] sm:$0xff] }
 0x150   :  { %v4157_v9 = vcombine.high %v358_v4, %v362_v5  ;;  %v406_v52 = vld [vmem:[%s6020_s1 + $0xbd0] sm:$0xff] }
 0x151   :  { %2852 = vmatmul.mubr.bf16.vlgmr.msra.gmra.mrb[4].mxu0 %v4975_v22  ;;  %3016 = vmatmul.mubr.bf16.vlgmr.msra.gmra.mrb[4].mxu1 %v4975_v22  ;;  %v311_v22 = vld [vmem:[%s6020_s1 + $0x8d8] sm:$0xff]  ;;  %v410_v54 = vld [vmem:[%s6020_s1 + $0xbf0] sm:$0xff] }
 0x152   :  { %2861 = vmatpush1.bf16.msra.mxu0 %v4084_v6  ;;  %3025 = vmatpush1.bf16.msra.mxu1 %v4086_v57  ;;  %v4111_v24 = vcombine.high %v311_v22, %v315_v21  ;;  %v4110_v29 = vcombine.low %v311_v22, %v315_v21  ;;  %v359_v6 = vld [vmem:[%s6020_s1 + $0xa58] sm:$0xff]  ;;  %v4148_v57 = vcombine.low %v350_v60, %v354_v61  ;;  %v374_v22 = vld [vmem:[%s6020_s1 + $0xad0] sm:$0xff] }
 0x153   :  { %2862 = vmatprep.subr.bf16.mxu0 %v4093_v8  ;;  %3026 = vmatprep.subr.bf16.mxu1 %v4095_v11  ;;  %v4150_v8 = vcombine.low %v351_v62, %v355_v63  ;;  %v4159_v10 = vcombine.high %v359_v6, %v363_v7  ;;  %v366_v11 = vld [vmem:[%s6020_s1 + $0xa90] sm:$0xff]  ;;  %v4205_v60 = vcombine.high %v406_v52, %v410_v54 }
 0x154   :  { %2892 = vmatprep.mubr.bf16.mxu0 %v4996_v31  ;;  %3056 = vmatprep.mubr.bf16.mxu1 %v4996_v31  ;;  %v319_v31 = vld [vmem:[%s6020_s1 + $0x918] sm:$0xff]  ;;  %v4165_v53 = vcombine.high %v366_v11, %v370_v12  ;;  %v378_v21 = vld [vmem:[%s6020_s1 + $0xaf0] sm:$0xff] }
 0x155   :  { %v4119_v32 = vcombine.high %v319_v31, %v323_v15  ;;  %v4118_v39 = vcombine.low %v319_v31, %v323_v15  ;;  %v4173_v26 = vcombine.high %v374_v22, %v378_v21  ;;  %v382_v31 = vld [vmem:[%s6020_s1 + $0xb10] sm:$0xff] }
 0x156   :  { %2863 = vmatpush1.bf16.msra.mxu0 %v4092_v13  ;;  %3027 = vmatpush1.bf16.msra.mxu1 %v4094_v14  ;;  %v367_v13 = vld [vmem:[%s6020_s1 + $0xa98] sm:$0xff]  ;;  %v386_v15 = vld [vmem:[%s6020_s1 + $0xb30] sm:$0xff] }
 0x157   :  { %2864 = vmatprep.subr.bf16.mxu0 %v4101_v16  ;;  %3028 = vmatprep.subr.bf16.mxu1 %v4103_v17  ;;  %v371_v14 = vld [vmem:[%s6020_s1 + $0xab8] sm:$0xff]  ;;  %v4156_v16 = vcombine.low %v358_v4, %v362_v5  ;;  %v4158_v17 = vcombine.low %v359_v6, %v363_v7  ;;  %v4181_v33 = vcombine.high %v382_v31, %v386_v15  ;;  %v414_v62 = vld [vmem:[%s6020_s1 + $0xc10] sm:$0xff] }
 0x158   :  { %v4167_v18 = vcombine.high %v367_v13, %v371_v14  ;;  %v418_v63 = vld [vmem:[%s6020_s1 + $0xc30] sm:$0xff] }
 0x159   :  { %v4213_v4 = vcombine.high %v414_v62, %v418_v63  ;;  %v4212_v6 = vcombine.low %v414_v62, %v418_v63  ;;  %v4468_v62 = vld [vmem:[%s6022_s3 + $0x38] sm:$0xff]  }
 0x15a   :  { %2865 = vmatpush1.bf16.msra.mxu0 %v4100_v19  ;;  %3029 = vmatpush1.bf16.msra.mxu1 %v4102_v20  ;;  %v375_v19 = vld [vmem:[%s6020_s1 + $0xad8] sm:$0xff] }
 0x15b   :  { %2866 = vmatprep.subr.bf16.mxu0 %v4109_v23  ;;  %3030 = vmatprep.subr.bf16.mxu1 %v4111_v24  ;;  %v379_v20 = vld [vmem:[%s6020_s1 + $0xaf8] sm:$0xff]  ;;  %v4164_v23 = vcombine.low %v366_v11, %v370_v12  ;;  %v4166_v24 = vcombine.low %v367_v13, %v371_v14  ;;  %v4441_v12 = vld [vmem:[%s6022_s3 + $0x80] sm:$0xff]   ;;  %v4444_v14 = vld [vmem:[%s6022_s3 + $0x8] sm:$0xff]  }
 0x15c   :  { %v4175_v27 = vcombine.high %v375_v19, %v379_v20  ;;  %v4506_v13 = vld [vmem:[%s6021_s0 + $0x18] ss:$0 sps:$4 sm:$0xff]  }
 0x15e   :  { %2867 = vmatpush1.bf16.msra.mxu0 %v4108_v28  ;;  %3031 = vmatpush1.bf16.msra.mxu1 %v4110_v29  ;;  %v383_v28 = vld [vmem:[%s6020_s1 + $0xb18] sm:$0xff] }
 0x15f   :  { %2868 = vmatprep.subr.bf16.mxu0 %v4117_v30  ;;  %3032 = vmatprep.subr.bf16.mxu1 %v4119_v32  ;;  %v387_v29 = vld [vmem:[%s6020_s1 + $0xb38] sm:$0xff]  ;;  %v4172_v30 = vcombine.low %v374_v22, %v378_v21  ;;  %v4174_v32 = vcombine.low %v375_v19, %v379_v20  ;;  %v4447_v21 = vld [vmem:[%s6022_s3 + $0xd0] sm:$0xff]  }
 0x160   :  { %v4183_v35 = vcombine.high %v383_v28, %v387_v29  ;;  %v4448_v19 = vld [vmem:[%s6022_s3 + $0x10] sm:$0xff]  }
 0x162   :  { %2869 = vmatpush1.bf16.msra.mxu0 %v4116_v38  ;;  %3033 = vmatpush1.bf16.msra.mxu1 %v4118_v39  ;;  %v391_v38 = vld [vmem:[%s6020_s1 + $0xb58] sm:$0xff] }
 0x163   :  { %2870 = vmatprep.subr.bf16.mxu0 %v4125_v25  ;;  %3034 = vmatprep.subr.bf16.mxu1 %v4127_v40  ;;  %v395_v39 = vld [vmem:[%s6020_s1 + $0xb78] sm:$0xff]  ;;  %v4180_v25 = vcombine.low %v382_v31, %v386_v15  ;;  %v4182_v40 = vcombine.low %v383_v28, %v387_v29 }
 0x164   :  { %v4191_v43 = vcombine.high %v391_v38, %v395_v39  ;;  %v4451_v31 = vld [vmem:[%s6022_s3 + $0xd8] sm:$0xff]  }
 0x166   :  { %2871 = vmatpush1.bf16.msra.mxu0 %v4124_v46  ;;  %3035 = vmatpush1.bf16.msra.mxu1 %v4126_v47  ;;  %v399_v46 = vld [vmem:[%s6020_s1 + $0xb98] sm:$0xff] }
 0x167   :  { %2872 = vmatprep.subr.bf16.mxu0 %v4133_v48  ;;  %3036 = vmatprep.subr.bf16.mxu1 %v4135_v49  ;;  %v403_v47 = vld [vmem:[%s6020_s1 + $0xbb8] sm:$0xff]  ;;  %v4188_v48 = vcombine.low %v390_v36, %v394_v37  ;;  %v4190_v49 = vcombine.low %v391_v38, %v395_v39 }
 0x168   :  { %v4199_v51 = vcombine.high %v399_v46, %v403_v47  ;;  %v4453_v38 = vld [vmem:[%s6022_s3 + $0x98] sm:$0xff]  }
 0x16a   :  { %2873 = vmatpush1.bf16.msra.mxu0 %v4132_v55  ;;  %3037 = vmatpush1.bf16.msra.mxu1 %v4134_v56  ;;  %v407_v55 = vld [vmem:[%s6020_s1 + $0xbd8] sm:$0xff] }
 0x16b   :  { %2874 = vmatprep.subr.bf16.mxu0 %v4141_v58  ;;  %3038 = vmatprep.subr.bf16.mxu1 %v4143_v59  ;;  %v411_v56 = vld [vmem:[%s6020_s1 + $0xbf8] sm:$0xff]  ;;  %v4196_v58 = vcombine.low %v398_v44, %v402_v45  ;;  %v4198_v59 = vcombine.low %v399_v46, %v403_v47  ;;  %v4456_v44 = vld [vmem:[%s6022_s3 + $0x20] sm:$0xff]   ;;  %v4458_v46 = vld [vmem:[%s6022_s3 + $0x68] sm:$0xff]  }
 0x16c   :  { %v4207_v61 = vcombine.high %v407_v55, %v411_v56  ;;  %v4457_v45 = vld [vmem:[%s6022_s3 + $0xa0] sm:$0xff]   ;;  %v4459_v47 = vld [vmem:[%s6022_s3 + $0xe8] sm:$0xff]  }
 0x16e   :  { %2875 = vmatpush1.bf16.msra.mxu0 %v4140_v0  ;;  %3039 = vmatpush1.bf16.msra.mxu1 %v4142_v1  ;;  %v415_v0 = vld [vmem:[%s6020_s1 + $0xc18] sm:$0xff] }
 0x16f   :  { %2876 = vmatprep.subr.bf16.mxu0 %v4149_v2  ;;  %3040 = vmatprep.subr.bf16.mxu1 %v4151_v3  ;;  %v419_v1 = vld [vmem:[%s6020_s1 + $0xc38] sm:$0xff]  ;;  %v4204_v2 = vcombine.low %v406_v52, %v410_v54  ;;  %v4206_v3 = vcombine.low %v407_v55, %v411_v56  ;;  %v4463_v54 = vld [vmem:[%s6022_s3 + $0xf0] sm:$0xff]  }
 0x170   :  { %v4215_v5 = vcombine.high %v415_v0, %v419_v1  ;;  %v4214_v7 = vcombine.low %v415_v0, %v419_v1  ;;  %v4464_v55 = vld [vmem:[%s6022_s3 + $0x30] sm:$0xff]   ;;  %v4469_v0 = vld [vmem:[%s6022_s3 + $0xb8] sm:$0xff]   ;;  %v4470_v1 = vld [vmem:[%s6022_s3 + $0x140] sm:$0xff]  }
 0x172   :  { %2877 = vmatpush1.bf16.msra.mxu0 %v4148_v57  ;;  %3041 = vmatpush1.bf16.msra.mxu1 %v4150_v8  ;;  %v4438_v57 = vld [vmem:[%s6022_s3 + $0x40] sm:$0xff]  }
 0x173   :  { %2878 = vmatprep.subr.bf16.mxu0 %v4157_v9  ;;  %3042 = vmatprep.subr.bf16.mxu1 %v4159_v10  ;;  %v4439_v8 = vld [vmem:[%s6022_s3 + $0xc0] sm:$0xff]   ;;  %v422_v9 = vlaneseq }
 0x174   :  { %v4440_v10 = vld [vmem:[%s6022_s3] sm:$0xff]  }
 0x175   :  { %v5800_v11 = vshrl.u32 %v422_v9, 7  ;;  %v4476_v9 = vld [vmem:[%s6022_s3 + $0x108] sm:$0xff]  }
 0x176   :  { %2879 = vmatpush1.bf16.msra.mxu0 %v4156_v16  ;;  %3043 = vmatpush1.bf16.msra.mxu1 %v4158_v17  ;;  %v4445_v17 = vld [vmem:[%s6022_s3 + $0x88] sm:$0xff]  }
 0x177   :  { %2880 = vmatprep.subr.bf16.mxu0 %v4165_v53  ;;  %3044 = vmatprep.subr.bf16.mxu1 %v4167_v18  ;;  %v428_v16 = vsub.s32 1, %v5800_v11  ;;  %v4446_v53 = vld [vmem:[%s6022_s3 + $0x50] sm:$0xff]   ;;  %v5829_v18 = vld [vmem:[%s6023_s2] sm:$0xff]  ;;  %v436_v22 = vsub.s32 3, %v5800_v11  ;;  %v432_v52 = vsub.s32 2, %v5800_v11 }
 0x179   :  { %v429_v20 = vrot.slane %v5829_v18, %v428_v16  ;;  %v4483_v16 = vld [vmem:[%s6022_s3 + $0x1d8] sm:$0xff]  }
 0x17a   :  { %2881 = vmatpush1.bf16.msra.mxu0 %v4164_v23  ;;  %3045 = vmatpush1.bf16.msra.mxu1 %v4166_v24  ;;  %v4449_v23 = vld [vmem:[%s6022_s3 + $0x90] sm:$0xff]   ;;  %v437_v24 = vrot.slane %v5829_v18, %v436_v22  ;;  %v4486_v22 = vld [vmem:[%s6022_s3 + $0x160] sm:$0xff]  }
 0x17b   :  { %2882 = vmatprep.subr.bf16.mxu0 %v4173_v26  ;;  %3046 = vmatprep.subr.bf16.mxu1 %v4175_v27  ;;  %v4450_v26 = vld [vmem:[%s6022_s3 + $0x58] sm:$0xff]  }
 0x17e   :  { %2883 = vmatpush1.bf16.msra.mxu0 %v4172_v30  ;;  %3047 = vmatpush1.bf16.msra.mxu1 %v4174_v32 }
 0x17f   :  { %2884 = vmatprep.subr.bf16.mxu0 %v4181_v33  ;;  %3048 = vmatprep.subr.bf16.mxu1 %v4183_v35  ;;  %v4452_v33 = vld [vmem:[%s6022_s3 + $0x18] sm:$0xff]  }
 0x182   :  { %2885 = vmatpush1.bf16.msra.mxu0 %v4180_v25  ;;  %3049 = vmatpush1.bf16.msra.mxu1 %v4182_v40  ;;  %v4454_v40 = vld [vmem:[%s6022_s3 + $0x60] sm:$0xff]  }
 0x183   :  { %2886 = vmatprep.subr.bf16.mxu0 %v4189_v41  ;;  %3050 = vmatprep.subr.bf16.mxu1 %v4191_v43  ;;  %v4455_v41 = vld [vmem:[%s6022_s3 + $0xe0] sm:$0xff]  }
 0x186   :  { %2887 = vmatpush1.bf16.msra.mxu0 %v4188_v48  ;;  %3051 = vmatpush1.bf16.msra.mxu1 %v4190_v49  ;;  %v4460_v48 = vld [vmem:[%s6022_s3 + $0x28] sm:$0xff]   ;;  %v424_v49 = vsub.s32 0, %v5800_v11 }
 0x187   :  { %2888 = vmatprep.subr.bf16.mxu0 %v4197_v50  ;;  %3052 = vmatprep.subr.bf16.mxu1 %v4199_v51  ;;  %v4461_v50 = vld [vmem:[%s6022_s3 + $0xa8] sm:$0xff]   ;;  %v4462_v51 = vld [vmem:[%s6022_s3 + $0x70] sm:$0xff]  }
 0x188   :  { %v425_v56 = vrot.slane %v5829_v18, %v424_v49 }
 0x18a   :  { %2889 = vmatpush1.bf16.msra.mxu0 %v4196_v58  ;;  %3053 = vmatpush1.bf16.msra.mxu1 %v4198_v59  ;;  %v4465_v58 = vld [vmem:[%s6022_s3 + $0xb0] sm:$0xff]   ;;  %v4466_v59 = vld [vmem:[%s6022_s3 + $0x78] sm:$0xff]  }
 0x18b   :  { %2890 = vmatprep.subr.bf16.mxu0 %v4205_v60  ;;  %3054 = vmatprep.subr.bf16.mxu1 %v4207_v61  ;;  %v433_v60 = vrot.slane %v5829_v18, %v432_v52  ;;  %v4467_v61 = vld [vmem:[%s6022_s3 + $0xf8] sm:$0xff]  }
 0x18e   :  { %2891 = vmatpush1.bf16.msra.mxu0 %v4204_v2  ;;  %3055 = vmatpush1.bf16.msra.mxu1 %v4206_v3  ;;  %v4471_v3 = vld [vmem:[%s6022_s3 + $0x1c0] sm:$0xff]  }
 0x18f   :  { %2901 = vmatprep.subr.bf16.mxu0 %v4213_v4  ;;  %3065 = vmatprep.subr.bf16.mxu1 %v4215_v5  ;;  %v4472_v4 = vld [vmem:[%s6022_s3 + $0x100] sm:$0xff]  }
 0x191   :  { %2893 = vmatmul.mubr.bf16.vlgmr.msra.gmra.mrb[4].mxu0 %v5178_v34  ;;  %3057 = vmatmul.mubr.bf16.vlgmr.msra.gmra.mrb[4].mxu1 %v5178_v34  ;;  %v4442_v34 = vld [vmem:[%s6022_s3 + $0x48] sm:$0xff]  }
 0x192   :  { %2902 = vmatpush1.bf16.msra.mxu0 %v4212_v6  ;;  %3066 = vmatpush1.bf16.msra.mxu1 %v4214_v7  ;;  %v4473_v6 = vld [vmem:[%s6022_s3 + $0x180] sm:$0xff]   ;;  %v4474_v7 = vld [vmem:[%s6022_s3 + $0x148] sm:$0xff]  }
 0x193   :  { %2933 = vmatprep.mubr.bf16.mxu0 %v4507_v42  ;;  %3097 = vmatprep.mubr.bf16.mxu1 %v4507_v42  ;;  %v4443_v42 = vld [vmem:[%s6022_s3 + $0xc8] sm:$0xff]  }
 0x194   :  { %4286 = vmatprep.subr.bf16.mxu0 %v4438_v57  ;;  %4308 = vmatprep.subr.bf16.mxu1 %v4439_v8  ;;  %v4475_v8 = vld [vmem:[%s6022_s3 + $0x1c8] sm:$0xff]  }
 0x19d   :  { %4218 = vmatmul.mubr.msk.bf16.vlgmr.msra.gmra.mrb[4].mxu0 %vm2446_vm0, %v4506_v13  ;;  %4219 = vmatmul.mubr.msk.bf16.vlgmr.msra.gmra.mrb[4].mxu1 %vm2446_vm0, %v4506_v13  ;;  %v4481_v13 = vld [vmem:[%s6022_s3 + $0x190] sm:$0xff]  }
 0x19e   :  { %4287 = vmatpush3.bf16.msra.mxu0 %v4440_v10  ;;  %4309 = vmatpush3.bf16.msra.mxu1 %v4441_v12  ;;  %v4477_v10 = vld [vmem:[%s6022_s3 + $0x188] sm:$0xff]   ;;  %v4478_v12 = vld [vmem:[%s6022_s3 + $0x150] sm:$0xff]  }
 0x19f   :  { %4288 = vmatprep.subr.bf16.mxu0 %v4442_v34  ;;  %4310 = vmatprep.subr.bf16.mxu1 %v4443_v42  ;;  %v4479_v34 = vld [vmem:[%s6022_s3 + $0x1d0] sm:$0xff]  }
 0x1a0   :  { %v4480_v42 = vld [vmem:[%s6022_s3 + $0x110] sm:$0xff]  }
 0x1a2   :  { %4289 = vmatpush3.bf16.msra.mxu0 %v4444_v14  ;;  %4311 = vmatpush3.bf16.msra.mxu1 %v4445_v17  ;;  %v4482_v14 = vld [vmem:[%s6022_s3 + $0x158] sm:$0xff]  }
 0x1a3   :  { %4290 = vmatprep.subr.bf16.mxu0 %v4446_v53  ;;  %4312 = vmatprep.subr.bf16.mxu1 %v4447_v21  ;;  %v4484_v17 = vld [vmem:[%s6022_s3 + $0x118] sm:$0xff]   ;;  %v4487_v21 = vld [vmem:[%s6022_s3 + $0x1e0] sm:$0xff]  }
 0x1a4   :  { %v2607_v27 = vpop.f32.mrb[0].mxu0  ;;  %v2771_v15 = vpop.f32.mrb[0].mxu1  ;;  %v4485_v53 = vld [vmem:[%s6022_s3 + $0x198] sm:$0xff]  }
 0x1a5   :  { %v2609_v28 = vpop.f32.mrb[1].mxu0  ;;  %v2773_v30 = vpop.f32.mrb[1].mxu1  ;;  %v4374_v63 = vadd.f32 %v2607_v27, %v425_v56  ;;  %v4376_v2 = vadd.f32 %v2771_v15, %v433_v60  ;;  %v4493_v27 = vld [vmem:[%s6022_s3 + $0x1a8] sm:$0xff]   ;;  %v4495_v15 = vld [vmem:[%s6022_s3 + $0x1f0] sm:$0xff]  }
 0x1a6   :  { %4291 = vmatpush3.bf16.msra.mxu0 %v4448_v19  ;;  %v4375_v29 = vadd.f32 %v2609_v28, %v429_v20  ;;  %v2611_v32 = vpop.f32.mrb[2].mxu0  ;;  %4313 = vmatpush3.bf16.msra.mxu1 %v4449_v23  ;;  %v4377_v35 = vadd.f32 %v2773_v30, %v437_v24  ;;  %v2775_v36 = vpop.f32.mrb[2].mxu1  ;;  %v4488_v19 = vld [vmem:[%s6022_s3 + $0x120] sm:$0xff]   ;;  %v4490_v23 = vld [vmem:[%s6022_s3 + $0x168] sm:$0xff]   ;;  %v4496_v28 = vld [vmem:[%s6022_s3 + $0x130] sm:$0xff]  }
 0x1a7   :  { %v2612_v37 = vpop.f32.mrb[3].mxu0  ;;  %4292 = vmatprep.subr.bf16.mxu0 %v4450_v26  ;;  %v2776_v25 = vpop.f32.mrb[3].mxu1  ;;  %4314 = vmatprep.subr.bf16.mxu1 %v4451_v31  ;;  %v3106_v5 = vpack.c.bf16 %v4374_v63, %v4374_v63  ;;  %v3108_v57 = vpack.c.bf16 %v4376_v2, %v4376_v2  ;;  %v4489_v20 = vld [vmem:[%s6022_s3 + $0x1a0] sm:$0xff]   ;;  %v4491_v24 = vld [vmem:[%s6022_s3 + $0x1e8] sm:$0xff]   ;;  %v4494_v31 = vld [vmem:[%s6022_s3 + $0x170] sm:$0xff]   ;;  %v440_v36 = vsub.s32 4, %v5800_v11 }
 0x1a8   :  { %v3107_v39 = vpack.c.bf16 %v4375_v29, %v4375_v29  ;;  %v3109_v43 = vpack.c.bf16 %v4377_v35, %v4377_v35  ;;  %v4492_v26 = vld [vmem:[%s6022_s3 + $0x128] sm:$0xff]   ;;  %v4497_v29 = vld [vmem:[%s6022_s3 + $0x1b0] sm:$0xff]   ;;  %v4498_v30 = vld [vmem:[%s6022_s3 + $0x178] sm:$0xff]   ;;  %v448_v37 = vsub.s32 6, %v5800_v11 }
 0x1a9   :  { %v4499_v32 = vld [vmem:[%s6022_s3 + $0x1f8] sm:$0xff]   ;;  %v441_v25 = vrot.slane %v5829_v18, %v440_v36 }
 0x1aa   :  { %4293 = vmatpush3.bf16.msra.mxu0 %v4452_v33  ;;  %3665 = vmatprep.mubr.bf16.mxu0 %v3107_v39  ;;  %v4500_v33 = vld [vmem:[%s6022_s3 + $0x138] sm:$0xff]   ;;  %v452_v39 = vsub.s32 7, %v5800_v11 }
 0x1ab   :  { %4315 = vmatpush3.bf16.msra.mxu1 %v4453_v38  ;;  %3705 = vmatprep.mubr.bf16.mxu1 %v3109_v43  ;;  %v4501_v35 = vld [vmem:[%s6022_s3 + $0x1b8] sm:$0xff]   ;;  %v444_v38 = vsub.s32 5, %v5800_v11 }
 0x1ac   :  { %4294 = vmatprep.subr.bf16.mxu0 %v4454_v40  ;;  %4316 = vmatprep.subr.bf16.mxu1 %v4455_v41  ;;  %v449_v40 = vrot.slane %v5829_v18, %v448_v37  ;;  %v453_v43 = vrot.slane %v5829_v18, %v452_v39 }
 0x1ad   :  { %v445_v41 = vrot.slane %v5829_v18, %v444_v38 }
 0x1ae   :  { %4295 = vmatpush3.bf16.msra.mxu0 %v4456_v44 }
 0x1af   :  { %4317 = vmatpush3.bf16.msra.mxu1 %v4457_v45  ;;  %4296 = vmatprep.subr.bf16.mxu0 %v4458_v46 }
 0x1b0   :  { %4318 = vmatprep.subr.bf16.mxu1 %v4459_v47 }
 0x1b2   :  { %4297 = vmatpush3.bf16.msra.mxu0 %v4460_v48 }
 0x1b3   :  { %4319 = vmatpush3.bf16.msra.mxu1 %v4461_v50  ;;  %4298 = vmatprep.subr.bf16.mxu0 %v4462_v51 }
 0x1b4   :  { %4320 = vmatprep.subr.bf16.mxu1 %v4463_v54 }
 0x1b6   :  { %4299 = vmatpush3.bf16.msra.mxu0 %v4464_v55 }
 0x1b7   :  { %4321 = vmatpush3.bf16.msra.mxu1 %v4465_v58  ;;  %4300 = vmatprep.subr.bf16.mxu0 %v4466_v59 }
 0x1b8   :  { %4322 = vmatprep.subr.bf16.mxu1 %v4467_v61 }
 0x1ba   :  { %4301 = vmatpush3.bf16.msra.mxu0 %v4468_v62  ;;  %v4220_v62 = vld [vmem:[%s6024_s4] ss:$0 sm:$0xff] }
 0x1bb   :  { %4323 = vmatpush3.bf16.msra.mxu1 %v4469_v0  ;;  %4330 = vmatprep.subr.bf16.mxu0 %v4470_v1 }
 0x1bc   :  { %4352 = vmatprep.subr.bf16.mxu1 %v4471_v3 }
 0x1bd   :  { %3666 = vmatmul.mubr.bf16.vlgmr.msra.gmra.mrb[8].mxu0 %v3106_v5 }
 0x1be   :  { %3706 = vmatmul.mubr.bf16.vlgmr.msra.gmra.mrb[8].mxu1 %v3108_v57  ;;  %4331 = vmatpush3.bf16.msra.mxu0 %v4472_v4 }
 0x1bf   :  { %4353 = vmatpush3.bf16.msra.mxu1 %v4473_v6  ;;  %4332 = vmatprep.subr.bf16.mxu0 %v4474_v7 }
 0x1c0   :  { %4354 = vmatprep.subr.bf16.mxu1 %v4475_v8 }
 0x1c2   :  { %4333 = vmatpush3.bf16.msra.mxu0 %v4476_v9 }
 0x1c3   :  { %4355 = vmatpush3.bf16.msra.mxu1 %v4477_v10  ;;  %4334 = vmatprep.subr.bf16.mxu0 %v4478_v12 }
 0x1c4   :  { %4356 = vmatprep.subr.bf16.mxu1 %v4479_v34 }
 0x1c6   :  { %4335 = vmatpush3.bf16.msra.mxu0 %v4480_v42 }
 0x1c7   :  { %4357 = vmatpush3.bf16.msra.mxu1 %v4481_v13  ;;  %4336 = vmatprep.subr.bf16.mxu0 %v4482_v14 }
 0x1c8   :  { %4358 = vmatprep.subr.bf16.mxu1 %v4483_v16 }
 0x1ca   :  { %4337 = vmatpush3.bf16.msra.mxu0 %v4484_v17 }
 0x1cb   :  { %4359 = vmatpush3.bf16.msra.mxu1 %v4485_v53  ;;  %4338 = vmatprep.subr.bf16.mxu0 %v4486_v22 }
 0x1cc   :  { %4360 = vmatprep.subr.bf16.mxu1 %v4487_v21  ;;  %v4285_v21 = vld [vmem:[%s6025_s5] ss:$0 sm:$0xff] }
 0x1ce   :  { %4339 = vmatpush3.bf16.msra.mxu0 %v4488_v19 }
 0x1cf   :  { %4361 = vmatpush3.bf16.msra.mxu1 %v4489_v20  ;;  %4340 = vmatprep.subr.bf16.mxu0 %v4490_v23 }
 0x1d0   :  { %4362 = vmatprep.subr.bf16.mxu1 %v4491_v24 }
 0x1d2   :  { %4341 = vmatpush3.bf16.msra.mxu0 %v4492_v26 }
 0x1d3   :  { %4363 = vmatpush3.bf16.msra.mxu1 %v4493_v27  ;;  %4342 = vmatprep.subr.bf16.mxu0 %v4494_v31 }
 0x1d4   :  { %4364 = vmatprep.subr.bf16.mxu1 %v4495_v15 }
 0x1d6   :  { %4343 = vmatpush3.bf16.msra.mxu0 %v4496_v28 }
 0x1d7   :  { %4365 = vmatpush3.bf16.msra.mxu1 %v4497_v29  ;;  %4344 = vmatprep.subr.bf16.mxu0 %v4498_v30 }
 0x1d8   :  { %4366 = vmatprep.subr.bf16.mxu1 %v4499_v32 }
 0x1da   :  { %4345 = vmatpush3.bf16.msra.mxu0 %v4500_v33 }
 0x1db   :  { %4367 = vmatpush3.bf16.msra.mxu1 %v4501_v35 }
 0x270   :  { %v2935_v44 = vpop.f32.mrb[4].mxu0  ;;  %v3099_v46 = vpop.f32.mrb[4].mxu1 }
 0x271   :  { %v4378_v45 = vadd.f32 %v2935_v44, %v441_v25  ;;  %v2937_v47 = vpop.f32.mrb[5].mxu0  ;;  %v4380_v48 = vadd.f32 %v3099_v46, %v449_v40  ;;  %v3101_v50 = vpop.f32.mrb[5].mxu1 }
 0x272   :  { %v4379_v49 = vadd.f32 %v2937_v47, %v445_v41  ;;  %v2939_v51 = vpop.f32.mrb[6].mxu0  ;;  %v4381_v52 = vadd.f32 %v3101_v50, %v453_v43  ;;  %v3103_v54 = vpop.f32.mrb[6].mxu1 }
 0x273   :  { %v2940_v55 = vpop.f32.mrb[7].mxu0  ;;  %v3104_v56 = vpop.f32.mrb[7].mxu1  ;;  %v3110_v58 = vpack.c.bf16 %v4378_v45, %v4378_v45  ;;  %v3112_v60 = vpack.c.bf16 %v4380_v48, %v4380_v48 }
 0x274   :  { %v3111_v11 = vpack.c.bf16 %v4379_v49, %v4379_v49  ;;  %v3113_v59 = vpack.c.bf16 %v4381_v52, %v4381_v52 }
 0x276   :  { %3745 = vmatprep.mubr.bf16.mxu0 %v3111_v11  ;;  %3785 = vmatprep.mubr.bf16.mxu1 %v3113_v59 }
 0x277   :  { %3746 = vmatmul.mubr.bf16.vlgmr.msra.gmra.mrb[12].mxu0 %v3110_v58  ;;  %3786 = vmatmul.mubr.bf16.vlgmr.msra.gmra.mrb[12].mxu1 %v3112_v60 }
 0x290   :  { %v4302_v18 = vpop.f32.mrb[8].mxu0 }
 0x291   :  { %v4324_v61 = vpop.f32.mrb[8].mxu1  ;;  %v4303_v63 = vpop.f32.mrb[9].mxu0 }
 0x292   :  { %v4304_v0 = vadd.f32 %v4303_v63, %v4302_v18  ;;  %v4325_v1 = vpop.f32.mrb[9].mxu1  ;;  %v4305_v2 = vpop.f32.mrb[10].mxu0 }
 0x293   :  { %v4326_v3 = vadd.f32 %v4325_v1, %v4324_v61  ;;  %v4327_v4 = vpop.f32.mrb[10].mxu1  ;;  %v4306_v5 = vpop.f32.mrb[11].mxu0 }
 0x294   :  { %v3668_v6 = vadd.f32 %v4304_v0, %v4220_v62  ;;  %v4328_v7 = vpop.f32.mrb[11].mxu1 }
 0x296   :  { %v3708_v57 = vadd.f32 %v4326_v3, %v3668_v6 }
 0x34a   :  { %v4346_v8 = vpop.f32.mrb[12].mxu0  ;;  %v4368_v9 = vpop.f32.mrb[12].mxu1 }
 0x34b   :  { %v4347_v10 = vpop.f32.mrb[13].mxu0  ;;  %v4369_v34 = vpop.f32.mrb[13].mxu1 }
 0x34c   :  { %v4348_v12 = vadd.f32 %v4347_v10, %v4346_v8  ;;  %v4349_v42 = vpop.f32.mrb[14].mxu0  ;;  %v4370_v13 = vadd.f32 %v4369_v34, %v4368_v9  ;;  %v4371_v14 = vpop.f32.mrb[14].mxu1 }
 0x34d   :  { %v4350_v16 = vpop.f32.mrb[15].mxu0  ;;  %v4372_v53 = vpop.f32.mrb[15].mxu1 }
 0x34e   :  { %v3748_v17 = vadd.f32 %v4348_v12, %v3708_v57 }
 0x350   :  { %v3788_v22 = vadd.f32 %v4370_v13, %v3748_v17 }
 0x352   :  { %v3793_v19 = vmul.f32 %v3788_v22, %v3788_v22 }
 0x354   :  { %v3801_v20 = vadd.f32 %v4285_v21, %v3793_v19 }
 0x356   :  { %3802 = vmax.xlane.f32.xlu0 %v3801_v20 }
 0x3e3   :  { %v3803_v23 = vpop.xlane.xlu0 %3802 }
 0x3e4   :  { %v3804_v24 = vsub.f32 %v3801_v20, %v3803_v23 }
 0x3e6   :  { %v3805_v26 = vmul.f32 1.442695, %v3804_v24 }
 0x3e8   :  { %4502 = vpow2.f32 %v3805_v26 }
 0x3f2   :  { %v4503_v27 = vpop.eup %4502 }
 0x3f3   :  { %3807 = vadd.xlane.f32.xlu0 %v4503_v27 }
 0x480   :  { %v3808_v31 = vpop.xlane.xlu0 %3807 }
 0x481   :  { %4504 = vlog2.f32 %v3808_v31 }
 0x48b   :  { %v4505_v15 = vpop.eup %4504 }
 0x48c   :  { %v3810_v28 = vmul.f32 0.6931472, %v4505_v15 }
 0x48e   :  { %v3811_v29 = vsub.f32 %v3804_v24, %v3810_v28 }
 0x490   :  { %3812 = vst [vmem:[%s6026_s6] sm:$0xff] %v3811_v29 }

</bundles_post_ra>
